<compile_context>
chip_gen: v7x
topology: tpu7x:2x2x1
jax: 0.10.0
libtpu: 0.0.40
codegen_flags: <defaults>
</compile_context>

<pallas_src>
import functools

import jax
import jax.numpy as jnp
from jax.experimental import pallas as pl
from jax.experimental.pallas import tpu as pltpu


def _round_up(x, m):
    return (x + m - 1) // m * m


def _layer_norm_masked(x, gamma, beta, f_real, eps=1e-5):
    """LayerNorm over the first f_real columns; padded columns of x are zero and
    gamma/beta are zero-padded, so padded output columns stay exactly zero."""
    col = jax.lax.broadcasted_iota(jnp.int32, x.shape, x.ndim - 1)
    mask = (col < f_real).astype(x.dtype)
    mu = jnp.sum(x * mask, axis=-1, keepdims=True) / f_real
    d = (x - mu) * mask
    var = jnp.sum(d * d, axis=-1, keepdims=True) / f_real
    return (x - mu) * jax.lax.rsqrt(var + eps) * gamma + beta


# ---------------- kernel A: per-news conv + word attention + LayerNorm ----------------
def news_encoder_kernel(x_ref, cw_ref, cb_ref, a1w_ref, a1b_ref, a1q_ref,
                        g1_ref, b1_ref, news_ref, *, tn, T8, T_out, ws, F_real):
    F_pad = news_ref.shape[-1]
    xb = x_ref[...]                                        # (tn, Tpp, D) bf16

    # Conv2d((ws, D)) as `ws` shifted-slice bf16 MXU matmuls, f32 accumulate.
    acc = None
    for k in range(ws):                                    # ws is a small static int
        xk = xb[:, k:k + T8, :].reshape(tn * T8, -1)       # (tn*T8, D) bf16
        p = jnp.dot(xk, cw_ref[k], preferred_element_type=jnp.float32)
        acc = p if acc is None else acc + p
    conv = jnp.maximum(acc + cb_ref[...], 0.0)             # (tn*T8, F_pad) f32

    # Word-level additive attention (per news item), padded time steps masked.
    temp = jnp.tanh(
        jnp.dot(conv.astype(jnp.bfloat16), a1w_ref[...],
                preferred_element_type=jnp.float32) + a1b_ref[...])   # (tn*T8, Q_pad)
    conv3 = conv.reshape(tn, T8, F_pad)
    temp3 = temp.reshape(tn, T8, -1)
    scores = jnp.sum(temp3 * a1q_ref[...], axis=-1, keepdims=True)    # (tn, T8, 1)
    t_idx = jax.lax.broadcasted_iota(jnp.int32, scores.shape, 1)
    scores = jnp.where(t_idx < T_out, scores, -1e30)                  # mask padded time
    scores = scores - jnp.max(scores, axis=1, keepdims=True)
    w = jnp.exp(scores)
    w = w * pl.reciprocal(jnp.sum(w, axis=1, keepdims=True), approx=True)
    news = jnp.sum(w * conv3, axis=1)                                 # (tn, F_pad)

    news_ref[...] = _layer_norm_masked(news, g1_ref[...], b1_ref[...], F_real)


# ---------------- kernel B: user-level attention + LayerNorm ----------------
def user_attention_kernel(news_ref, a2w_ref, a2b_ref, a2q_ref, g2_ref, b2_ref,
                          user_ref, *, N_real, F_real):
    news = news_ref[...]                                   # (N_pad, F_pad) f32
    tempu = jnp.tanh(
        jnp.dot(news, a2w_ref[...], preferred_element_type=jnp.float32)
        + a2b_ref[...])                                    # (N_pad, Q_pad)
    su = jnp.sum(tempu * a2q_ref[...], axis=-1, keepdims=True)        # (N_pad, 1)
    n_idx = jax.lax.broadcasted_iota(jnp.int32, su.shape, 0)
    su = jnp.where(n_idx < N_real, su, -1e30)                         # mask padded news
    su = su - jnp.max(su, axis=0, keepdims=True)
    wu = jnp.exp(su)
    wu = wu * pl.reciprocal(jnp.sum(wu, axis=0, keepdims=True), approx=True)
    user = jnp.sum(wu * news, axis=0, keepdims=True)                  # (1, F_pad)
    user_ref[...] = _layer_norm_masked(user, g2_ref[...], b2_ref[...], F_real)


# -------------------- wrapper --------------------
@functools.partial(jax.jit, static_argnames=("window_size",))
def user_encoder_forward(word_embedding, params, *, window_size):
    N, T, D = word_embedding.shape
    ws = window_size
    pad = (ws - 1) // 2
    T_out = T + 2 * pad - ws + 1          # == T for odd ws
    F_real = params["conv_w"].shape[2]
    Q_real = params["att1_w"].shape[1]

    F_pad = _round_up(F_real, 128)
    Q_pad = _round_up(Q_real, 128)
    T8 = _round_up(T_out, 8)              # sublane-aligned conv-output time axis
    Tpp = T8 + ws - 1                     # padded input time (covers all ws shifts)

    # News tile: keep >= ~256 conv rows per MXU push, multiple of 8.
    tn = _round_up(max(1, 256 // T8), 8)
    tn = min(tn, _round_up(N, 8))
    N_pad = _round_up(N, tn)

    f32, bf16 = jnp.float32, jnp.bfloat16

    def pad_to(a, shape):
        return jnp.pad(a.astype(f32), [(0, s - d) for d, s in zip(a.shape, shape)])

    # Input: pad news axis to N_pad, time to Tpp ('same' conv padding + T8 tail),
    # cast the dominant HBM stream to bf16.  D stays UNPADDED (no 4x inflation).
    x = jnp.pad(word_embedding.astype(f32),
                ((0, N_pad - N), (pad, Tpp - T - pad), (0, 0))).astype(bf16)

    # Weights: zero-padded once (exactness preserved), matmul operands in bf16.
    cw = pad_to(params["conv_w"], (ws, D, F_pad)).astype(bf16)
    cb = pad_to(params["conv_b"], (1, F_pad))
    a1w = pad_to(params["att1_w"], (F_pad, Q_pad)).astype(bf16)
    a1b = pad_to(params["att1_b"], (1, Q_pad))
    a1q = pad_to(params["att1_q"], (1, Q_pad)).reshape(1, 1, Q_pad)
    g1 = pad_to(params["ln1_g"], (1, F_pad))
    b1 = pad_to(params["ln1_b"], (1, F_pad))
    a2w = pad_to(params["att2_w"], (F_pad, Q_pad))
    a2b = pad_to(params["att2_b"], (1, Q_pad))
    a2q = pad_to(params["att2_q"], (1, Q_pad))
    g2 = pad_to(params["ln2_g"], (1, F_pad))
    b2 = pad_to(params["ln2_b"], (1, F_pad))

    # ---- stage 1: per-news encoder, tiled over the news axis ----
    kern_a = functools.partial(news_encoder_kernel, tn=tn, T8=T8, T_out=T_out,
                               ws=ws, F_real=F_real)
    news_pad = pl.pallas_call(
        kern_a,
        out_shape=jax.ShapeDtypeStruct((N_pad, F_pad), f32),
        grid_spec=pltpu.PrefetchScalarGridSpec(
            num_scalar_prefetch=0,
            grid=(N_pad // tn,),
            in_specs=[
                pl.BlockSpec((tn, Tpp, D), lambda i: (i, 0, 0)),   # input tile
                pl.BlockSpec((ws, D, F_pad), lambda i: (0, 0, 0)),  # conv W
                pl.BlockSpec((1, F_pad), lambda i: (0, 0)),         # conv b
                pl.BlockSpec((F_pad, Q_pad), lambda i: (0, 0)),     # att1 W
                pl.BlockSpec((1, Q_pad), lambda i: (0, 0)),         # att1 b
                pl.BlockSpec((1, 1, Q_pad), lambda i: (0, 0, 0)),   # att1 q
                pl.BlockSpec((1, F_pad), lambda i: (0, 0)),         # ln1 gamma
                pl.BlockSpec((1, F_pad), lambda i: (0, 0)),         # ln1 beta
            ],
            out_specs=pl.BlockSpec((tn, F_pad), lambda i: (i, 0)),
        ),
        compiler_params=pltpu.CompilerParams(
            dimension_semantics=("parallel",),
            vmem_limit_bytes=32 * 1024 * 1024),
    )(x, cw, cb, a1w, a1b, a1q, g1, b1)

    # ---- stage 2: user-level attention + LayerNorm (tiny, single step) ----
    kern_b = functools.partial(user_attention_kernel, N_real=N, F_real=F_real)
    user_pad = pl.pallas_call(
        kern_b,
        out_shape=jax.ShapeDtypeStruct((1, F_pad), f32),
        grid_spec=pltpu.PrefetchScalarGridSpec(
            num_scalar_prefetch=0,
            grid=(1,),
            in_specs=[
                pl.BlockSpec((N_pad, F_pad), lambda i: (0, 0)),
                pl.BlockSpec((F_pad, Q_pad), lambda i: (0, 0)),
                pl.BlockSpec((1, Q_pad), lambda i: (0, 0)),
                pl.BlockSpec((1, Q_pad), lambda i: (0, 0)),
                pl.BlockSpec((1, F_pad), lambda i: (0, 0)),
                pl.BlockSpec((1, F_pad), lambda i: (0, 0)),
            ],
            out_specs=pl.BlockSpec((1, F_pad), lambda i: (0, 0)),
        ),
        compiler_params=pltpu.CompilerParams(
            dimension_semantics=("arbitrary",),
            vmem_limit_bytes=32 * 1024 * 1024),
    )(news_pad, a2w, a2b, a2q, g2, b2)

    # strip padding; PyTorch returns (user_rep (1, F), new_rep (1, N, F))
    new_rep = news_pad[:N, :F_real]
    user_rep = user_pad[:, :F_real]
    return user_rep, new_rep[None]


# -------------------- pure-JAX reference (for self-check) --------------------
def reference_forward(word_embedding, params, *, window_size):
    ws = window_size
    pad = (ws - 1) // 2
    N, T, D = word_embedding.shape
    T_out = T + 2 * pad - ws + 1
    x = jnp.pad(word_embedding, ((0, 0), (pad, pad), (0, 0)))
    conv = sum(jnp.einsum("ntd,df->ntf", x[:, k:k + T_out, :], params["conv_w"][k])
               for k in range(ws)) + params["conv_b"][None]
    conv = jnp.maximum(conv, 0.0)                              # (N, T_out, F)

    def additive_att(h, W, b, q, axis):
        t = jnp.tanh(h @ W + b)
        s = jnp.sum(t * q, axis=-1, keepdims=True)
        w = jax.nn.softmax(s, axis=axis)
        return jnp.sum(w * h, axis=axis)

    def layer_norm(h, g, b, eps=1e-5):
        mu = jnp.mean(h, -1, keepdims=True)
        var = jnp.mean((h - mu) ** 2, -1, keepdims=True)
        return (h - mu) * jax.lax.rsqrt(var + eps) * g + b

    news = additive_att(conv, params["att1_w"], params["att1_b"],
                        params["att1_q"], axis=1)              # (N, F)
    news = layer_norm(news, params["ln1_g"], params["ln1_b"])
    user = additive_att(news, params["att2_w"], params["att2_b"],
                        params["att2_q"], axis=0)              # (F,)
    user = layer_norm(user[None], params["ln2_g"], params["ln2_b"])
    return user, news[None]


def init_params(key, word_dim, num_filters, query_vector_dim, window_size):
    ks = jax.random.split(key, 8)
    s = 0.1
    return {
        "conv_w": s * jax.random.normal(ks[0], (window_size, word_dim, num_filters), jnp.float32),
        "conv_b": s * jax.random.normal(ks[1], (1, num_filters), jnp.float32),
        "att1_w": s * jax.random.normal(ks[2], (num_filters, query_vector_dim), jnp.float32),
        "att1_b": s * jax.random.normal(ks[3], (1, query_vector_dim), jnp.float32),
        "att1_q": s * jax.random.normal(ks[4], (1, query_vector_dim), jnp.float32),
        "ln1_g": jnp.ones((1, num_filters), jnp.float32),
        "ln1_b": jnp.zeros((1, num_filters), jnp.float32),
        "att2_w": s * jax.random.normal(ks[5], (num_filters, query_vector_dim), jnp.float32),
        "att2_b": s * jax.random.normal(ks[6], (1, query_vector_dim), jnp.float32),
        "att2_q": s * jax.random.normal(ks[7], (1, query_vector_dim), jnp.float32),
        "ln2_g": jnp.ones((1, num_filters), jnp.float32),
        "ln2_b": jnp.zeros((1, num_filters), jnp.float32),
    }


if __name__ == "__main__":
    # small, shape-consistent example
    N = 4                 # number of clicked news (user attention runs over these)
    T = 8                 # title_word_size
    D = 32                # word_dim
    F_ = 32               # num_filters
    Q = 16                # query_vector_dim
    WS = 3                # window_sizes (odd -> conv preserves T)

    key = jax.random.PRNGKey(0)
    k_x, k_p = jax.random.split(key)
    word_embedding = jax.random.normal(k_x, (N, T, D), jnp.float32)
    params = init_params(k_p, D, F_, Q, WS)

    user_rep, new_rep = user_encoder_forward(word_embedding, params, window_size=WS)
    jax.block_until_ready((user_rep, new_rep))

    assert user_rep.shape == (1, F_)
    assert new_rep.shape == (1, N, F_)

    # Numerical self-check.  The kernel uses bf16 MXU operands, so the reference
    # is fed bf16-quantized input / matmul weights to isolate true kernel error
    # (padding, time-step masking, approx reciprocal) rather than bf16 rounding.
    def q16(a):
        return a.astype(jnp.bfloat16).astype(jnp.float32)

    params_ref = dict(params)
    params_ref["conv_w"] = q16(params["conv_w"])
    params_ref["att1_w"] = q16(params["att1_w"])
    user_ref, new_ref = reference_forward(q16(word_embedding), params_ref, window_size=WS)
    assert jnp.allclose(user_rep, user_ref, atol=2e-2, rtol=2e-2)
    assert jnp.allclose(new_rep, new_ref, atol=2e-2, rtol=2e-2)

    print("KERNEL_OK")
</pallas_src>

<mosaic_0001>
module attributes {stable_mosaic.version = 11 : i64} {
  func.func @news_encoder_kernel(%arg0: i32, %arg1: memref<8x10x32xbf16, #tpu.memory_space<vmem>>, %arg2: memref<3x32x128xbf16, #tpu.memory_space<vmem>>, %arg3: memref<1x128xf32, #tpu.memory_space<vmem>>, %arg4: memref<128x128xbf16, #tpu.memory_space<vmem>>, %arg5: memref<1x128xf32, #tpu.memory_space<vmem>>, %arg6: memref<1x1x128xf32, #tpu.memory_space<vmem>>, %arg7: memref<1x128xf32, #tpu.memory_space<vmem>>, %arg8: memref<1x128xf32, #tpu.memory_space<vmem>>, %arg9: memref<8x128xf32, #tpu.memory_space<vmem>>) attributes {dimension_semantics = [#tpu.dimension_semantics<parallel>], iteration_bounds = array<i64: 1>, scalar_prefetch = 0 : i64, scratch_operands = 0 : i64, tpu.core_type = #tpu.core_type<tc>, window_params = [{transform_indices = @transform_0, window_bounds = array<i64: 8, 10, 32>}, {pipeline_mode = #tpu.pipeline_mode<synchronous>, transform_indices = @transform_1, window_bounds = array<i64: 3, 32, 128>}, {pipeline_mode = #tpu.pipeline_mode<synchronous>, transform_indices = @transform_2, window_bounds = array<i64: 1, 128>}, {pipeline_mode = #tpu.pipeline_mode<synchronous>, transform_indices = @transform_3, window_bounds = array<i64: 128, 128>}, {pipeline_mode = #tpu.pipeline_mode<synchronous>, transform_indices = @transform_4, window_bounds = array<i64: 1, 128>}, {pipeline_mode = #tpu.pipeline_mode<synchronous>, transform_indices = @transform_5, window_bounds = array<i64: 1, 1, 128>}, {pipeline_mode = #tpu.pipeline_mode<synchronous>, transform_indices = @transform_6, window_bounds = array<i64: 1, 128>}, {pipeline_mode = #tpu.pipeline_mode<synchronous>, transform_indices = @transform_7, window_bounds = array<i64: 1, 128>}, {transform_indices = @transform_8, window_bounds = array<i64: 8, 128>}]} {
    %c0 = arith.constant 0 : index
    %c0_0 = arith.constant 0 : index
    %c0_1 = arith.constant 0 : index
    %0 = vector.load %arg1[%c0, %c0_0, %c0_1] : memref<8x10x32xbf16, #tpu.memory_space<vmem>>, vector<8x10x32xbf16>
    %1 = vector.extract_strided_slice %0 {offsets = [0, 0, 0], sizes = [8, 8, 32], strides = [1, 1, 1]} : vector<8x10x32xbf16> to vector<8x8x32xbf16>
    %2 = vector.shape_cast %1 : vector<8x8x32xbf16> to vector<64x32xbf16>
    %c0_2 = arith.constant 0 : index
    %c0_3 = arith.constant 0 : index
    %c0_4 = arith.constant 0 : index
    %3 = vector.load %arg2[%c0_2, %c0_3, %c0_4] : memref<3x32x128xbf16, #tpu.memory_space<vmem>>, vector<1x32x128xbf16>
    %4 = vector.shape_cast %3 : vector<1x32x128xbf16> to vector<32x128xbf16>
    %cst = arith.constant dense<0.000000e+00> : vector<64x128xf32>
    %5 = tpu.matmul %2, %4, %cst {dimension_numbers = #tpu.dot_dimension_numbers<[1], [0], [0], [1], [0, 0, 1, 1], [], []>} : vector<64x32xbf16>, vector<32x128xbf16>, vector<64x128xf32> -> vector<64x128xf32>
    %6 = vector.extract_strided_slice %0 {offsets = [0, 1, 0], sizes = [8, 8, 32], strides = [1, 1, 1]} : vector<8x10x32xbf16> to vector<8x8x32xbf16>
    %7 = vector.shape_cast %6 : vector<8x8x32xbf16> to vector<64x32xbf16>
    %c1 = arith.constant 1 : index
    %c0_5 = arith.constant 0 : index
    %c0_6 = arith.constant 0 : index
    %8 = vector.load %arg2[%c1, %c0_5, %c0_6] : memref<3x32x128xbf16, #tpu.memory_space<vmem>>, vector<1x32x128xbf16>
    %9 = vector.shape_cast %8 : vector<1x32x128xbf16> to vector<32x128xbf16>
    %cst_7 = arith.constant dense<0.000000e+00> : vector<64x128xf32>
    %10 = tpu.matmul %7, %9, %cst_7 {dimension_numbers = #tpu.dot_dimension_numbers<[1], [0], [0], [1], [0, 0, 1, 1], [], []>} : vector<64x32xbf16>, vector<32x128xbf16>, vector<64x128xf32> -> vector<64x128xf32>
    %11 = arith.addf %5, %10 : vector<64x128xf32>
    %12 = vector.extract_strided_slice %0 {offsets = [0, 2, 0], sizes = [8, 8, 32], strides = [1, 1, 1]} : vector<8x10x32xbf16> to vector<8x8x32xbf16>
    %13 = vector.shape_cast %12 : vector<8x8x32xbf16> to vector<64x32xbf16>
    %c2 = arith.constant 2 : index
    %c0_8 = arith.constant 0 : index
    %c0_9 = arith.constant 0 : index
    %14 = vector.load %arg2[%c2, %c0_8, %c0_9] : memref<3x32x128xbf16, #tpu.memory_space<vmem>>, vector<1x32x128xbf16>
    %15 = vector.shape_cast %14 : vector<1x32x128xbf16> to vector<32x128xbf16>
    %cst_10 = arith.constant dense<0.000000e+00> : vector<64x128xf32>
    %16 = tpu.matmul %13, %15, %cst_10 {dimension_numbers = #tpu.dot_dimension_numbers<[1], [0], [0], [1], [0, 0, 1, 1], [], []>} : vector<64x32xbf16>, vector<32x128xbf16>, vector<64x128xf32> -> vector<64x128xf32>
    %17 = arith.addf %11, %16 : vector<64x128xf32>
    %c0_11 = arith.constant 0 : index
    %c0_12 = arith.constant 0 : index
    %18 = vector.load %arg3[%c0_11, %c0_12] : memref<1x128xf32, #tpu.memory_space<vmem>>, vector<1x128xf32>
    %19 = vector.broadcast %18 : vector<1x128xf32> to vector<64x128xf32>
    %20 = arith.addf %17, %19 : vector<64x128xf32>
    %cst_13 = arith.constant 0.000000e+00 : f32
    %21 = vector.broadcast %cst_13 : f32 to vector<64x128xf32>
    %22 = arith.maximumf %20, %21 : vector<64x128xf32>
    %23 = arith.truncf %22 : vector<64x128xf32> to vector<64x128xbf16>
    %c0_14 = arith.constant 0 : index
    %c0_15 = arith.constant 0 : index
    %24 = vector.load %arg4[%c0_14, %c0_15] : memref<128x128xbf16, #tpu.memory_space<vmem>>, vector<128x128xbf16>
    %cst_16 = arith.constant dense<0.000000e+00> : vector<64x128xf32>
    %25 = tpu.matmul %23, %24, %cst_16 {dimension_numbers = #tpu.dot_dimension_numbers<[1], [0], [0], [1], [0, 0, 1, 1], [], []>} : vector<64x128xbf16>, vector<128x128xbf16>, vector<64x128xf32> -> vector<64x128xf32>
    %c0_17 = arith.constant 0 : index
    %c0_18 = arith.constant 0 : index
    %26 = vector.load %arg5[%c0_17, %c0_18] : memref<1x128xf32, #tpu.memory_space<vmem>>, vector<1x128xf32>
    %27 = vector.broadcast %26 : vector<1x128xf32> to vector<64x128xf32>
    %28 = arith.addf %25, %27 : vector<64x128xf32>
    %29 = math.tanh %28 : vector<64x128xf32>
    %30 = vector.shape_cast %22 : vector<64x128xf32> to vector<8x8x128xf32>
    %31 = vector.shape_cast %29 : vector<64x128xf32> to vector<8x8x128xf32>
    %c0_19 = arith.constant 0 : index
    %c0_20 = arith.constant 0 : index
    %c0_21 = arith.constant 0 : index
    %32 = vector.load %arg6[%c0_19, %c0_20, %c0_21] : memref<1x1x128xf32, #tpu.memory_space<vmem>>, vector<1x1x128xf32>
    %33 = vector.broadcast %32 : vector<1x1x128xf32> to vector<8x8x128xf32>
    %34 = arith.mulf %31, %33 : vector<8x8x128xf32>
    %cst_22 = arith.constant dense<0.000000e+00> : vector<8x8xf32>
    %35 = vector.multi_reduction <add>, %34, %cst_22 [2] : vector<8x8x128xf32> to vector<8x8xf32>
    %36 = vector.shape_cast %35 : vector<8x8xf32> to vector<8x8x1xf32>
    %37 = tpu.iota {dimensions = array<i32: 1>} : vector<8x8x1xi32>
    %c8_i32 = arith.constant 8 : i32
    %38 = vector.broadcast %c8_i32 : i32 to vector<8x8x1xi32>
    %39 = arith.cmpi slt, %37, %38 : vector<8x8x1xi32>
    %cst_23 = arith.constant -1.000000e+30 : f32
    %40 = vector.broadcast %cst_23 : f32 to vector<8x8x1xf32>
    %41 = arith.select %39, %36, %40 : vector<8x8x1xi1>, vector<8x8x1xf32>
    %cst_24 = arith.constant dense<0xFF800000> : vector<8x1xf32>
    %42 = vector.multi_reduction <maximumf>, %41, %cst_24 [1] : vector<8x8x1xf32> to vector<8x1xf32>
    %43 = vector.shape_cast %42 : vector<8x1xf32> to vector<8x1x1xf32>
    %44 = vector.broadcast %43 : vector<8x1x1xf32> to vector<8x8x1xf32>
    %45 = arith.subf %41, %44 : vector<8x8x1xf32>
    %46 = math.exp %45 : vector<8x8x1xf32>
    %cst_25 = arith.constant dense<0.000000e+00> : vector<8x1xf32>
    %47 = vector.multi_reduction <add>, %46, %cst_25 [1] : vector<8x8x1xf32> to vector<8x1xf32>
    %48 = vector.shape_cast %47 : vector<8x1xf32> to vector<8x1x1xf32>
    %49 = tpu.reciprocal %48 {approx = true} : vector<8x1x1xf32> -> vector<8x1x1xf32>
    %50 = vector.broadcast %49 : vector<8x1x1xf32> to vector<8x8x1xf32>
    %51 = arith.mulf %46, %50 : vector<8x8x1xf32>
    %52 = vector.broadcast %51 : vector<8x8x1xf32> to vector<8x8x128xf32>
    %53 = arith.mulf %52, %30 : vector<8x8x128xf32>
    %cst_26 = arith.constant dense<0.000000e+00> : vector<8x128xf32>
    %54 = vector.multi_reduction <add>, %53, %cst_26 [1] : vector<8x8x128xf32> to vector<8x128xf32>
    %c0_27 = arith.constant 0 : index
    %c0_28 = arith.constant 0 : index
    %55 = vector.load %arg7[%c0_27, %c0_28] : memref<1x128xf32, #tpu.memory_space<vmem>>, vector<1x128xf32>
    %c0_29 = arith.constant 0 : index
    %c0_30 = arith.constant 0 : index
    %56 = vector.load %arg8[%c0_29, %c0_30] : memref<1x128xf32, #tpu.memory_space<vmem>>, vector<1x128xf32>
    %57 = tpu.iota {dimensions = array<i32: 1>} : vector<8x128xi32>
    %c32_i32 = arith.constant 32 : i32
    %58 = vector.broadcast %c32_i32 : i32 to vector<8x128xi32>
    %59 = arith.cmpi slt, %57, %58 : vector<8x128xi32>
    %60 = arith.extui %59 : vector<8x128xi1> to vector<8x128xi32>
    %61 = arith.sitofp %60 : vector<8x128xi32> to vector<8x128xf32>
    %62 = arith.mulf %54, %61 : vector<8x128xf32>
    %cst_31 = arith.constant dense<0.000000e+00> : vector<8xf32>
    %63 = vector.multi_reduction <add>, %62, %cst_31 [1] : vector<8x128xf32> to vector<8xf32>
    %64 = vector.shape_cast %63 : vector<8xf32> to vector<8x1xf32>
    %cst_32 = arith.constant 3.200000e+01 : f32
    %65 = vector.broadcast %cst_32 : f32 to vector<8x1xf32>
    %66 = arith.divf %64, %65 : vector<8x1xf32>
    %67 = vector.broadcast %66 : vector<8x1xf32> to vector<8x128xf32>
    %68 = arith.subf %54, %67 : vector<8x128xf32>
    %69 = arith.mulf %68, %61 : vector<8x128xf32>
    %70 = arith.mulf %69, %69 : vector<8x128xf32>
    %cst_33 = arith.constant dense<0.000000e+00> : vector<8xf32>
    %71 = vector.multi_reduction <add>, %70, %cst_33 [1] : vector<8x128xf32> to vector<8xf32>
    %72 = vector.shape_cast %71 : vector<8xf32> to vector<8x1xf32>
    %cst_34 = arith.constant 3.200000e+01 : f32
    %73 = vector.broadcast %cst_34 : f32 to vector<8x1xf32>
    %74 = arith.divf %72, %73 : vector<8x1xf32>
    %75 = vector.broadcast %66 : vector<8x1xf32> to vector<8x128xf32>
    %76 = arith.subf %54, %75 : vector<8x128xf32>
    %cst_35 = arith.constant 9.99999974E-6 : f32
    %77 = vector.broadcast %cst_35 : f32 to vector<8x1xf32>
    %78 = arith.addf %74, %77 : vector<8x1xf32>
    %79 = math.rsqrt %78 : vector<8x1xf32>
    %80 = vector.broadcast %79 : vector<8x1xf32> to vector<8x128xf32>
    %81 = arith.mulf %76, %80 : vector<8x128xf32>
    %82 = vector.broadcast %55 : vector<1x128xf32> to vector<8x128xf32>
    %83 = arith.mulf %81, %82 : vector<8x128xf32>
    %84 = vector.broadcast %56 : vector<1x128xf32> to vector<8x128xf32>
    %85 = arith.addf %83, %84 : vector<8x128xf32>
    %c0_36 = arith.constant 0 : index
    %c0_37 = arith.constant 0 : index
    %86 = vector.load %arg9[%c0_36, %c0_37] : memref<8x128xf32, #tpu.memory_space<vmem>>, vector<8x128xf32>
    tpu.vector_store %arg9[%c0_36, %c0_37], %85 {strides = array<i32>} : memref<8x128xf32, #tpu.memory_space<vmem>>, vector<8x128xf32>,
    return
  }
  func.func @transform_0(%arg0: i32) -> (i32, i32, i32) {
    %c0_i32 = arith.constant 0 : i32
    %c0_i32_0 = arith.constant 0 : i32
    %c0_i32_1 = arith.constant 0 : i32
    return %arg0, %c0_i32, %c0_i32_0 : i32, i32, i32
  }
  func.func @transform_1(%arg0: i32) -> (i32, i32, i32) {
    %c0_i32 = arith.constant 0 : i32
    %c0_i32_0 = arith.constant 0 : i32
    %c0_i32_1 = arith.constant 0 : i32
    %c0_i32_2 = arith.constant 0 : i32
    return %c0_i32, %c0_i32_0, %c0_i32_1 : i32, i32, i32
  }
  func.func @transform_2(%arg0: i32) -> (i32, i32) {
    %c0_i32 = arith.constant 0 : i32
    %c0_i32_0 = arith.constant 0 : i32
    %c0_i32_1 = arith.constant 0 : i32
    return %c0_i32, %c0_i32_0 : i32, i32
  }
  func.func @transform_3(%arg0: i32) -> (i32, i32) {
    %c0_i32 = arith.constant 0 : i32
    %c0_i32_0 = arith.constant 0 : i32
    %c0_i32_1 = arith.constant 0 : i32
    return %c0_i32, %c0_i32_0 : i32, i32
  }
  func.func @transform_4(%arg0: i32) -> (i32, i32) {
    %c0_i32 = arith.constant 0 : i32
    %c0_i32_0 = arith.constant 0 : i32
    %c0_i32_1 = arith.constant 0 : i32
    return %c0_i32, %c0_i32_0 : i32, i32
  }
  func.func @transform_5(%arg0: i32) -> (i32, i32, i32) {
    %c0_i32 = arith.constant 0 : i32
    %c0_i32_0 = arith.constant 0 : i32
    %c0_i32_1 = arith.constant 0 : i32
    %c0_i32_2 = arith.constant 0 : i32
    return %c0_i32, %c0_i32_0, %c0_i32_1 : i32, i32, i32
  }
  func.func @transform_6(%arg0: i32) -> (i32, i32) {
    %c0_i32 = arith.constant 0 : i32
    %c0_i32_0 = arith.constant 0 : i32
    %c0_i32_1 = arith.constant 0 : i32
    return %c0_i32, %c0_i32_0 : i32, i32
  }
  func.func @transform_7(%arg0: i32) -> (i32, i32) {
    %c0_i32 = arith.constant 0 : i32
    %c0_i32_0 = arith.constant 0 : i32
    %c0_i32_1 = arith.constant 0 : i32
    return %c0_i32, %c0_i32_0 : i32, i32
  }
  func.func @transform_8(%arg0: i32) -> (i32, i32) {
    %c0_i32 = arith.constant 0 : i32
    %c0_i32_0 = arith.constant 0 : i32
    return %arg0, %c0_i32 : i32, i32
  }
}

module attributes {stable_mosaic.version = 11 : i64} {
  func.func @user_attention_kernel(%arg0: i32, %arg1: memref<8x128xf32, #tpu.memory_space<vmem>>, %arg2: memref<128x128xf32, #tpu.memory_space<vmem>>, %arg3: memref<1x128xf32, #tpu.memory_space<vmem>>, %arg4: memref<1x128xf32, #tpu.memory_space<vmem>>, %arg5: memref<1x128xf32, #tpu.memory_space<vmem>>, %arg6: memref<1x128xf32, #tpu.memory_space<vmem>>, %arg7: memref<1x128xf32, #tpu.memory_space<vmem>>) attributes {dimension_semantics = [#tpu.dimension_semantics<arbitrary>], iteration_bounds = array<i64: 1>, scalar_prefetch = 0 : i64, scratch_operands = 0 : i64, tpu.core_type = #tpu.core_type<tc>, window_params = [{pipeline_mode = #tpu.pipeline_mode<synchronous>, transform_indices = @transform_0, window_bounds = array<i64: 8, 128>}, {pipeline_mode = #tpu.pipeline_mode<synchronous>, transform_indices = @transform_1, window_bounds = array<i64: 128, 128>}, {pipeline_mode = #tpu.pipeline_mode<synchronous>, transform_indices = @transform_2, window_bounds = array<i64: 1, 128>}, {pipeline_mode = #tpu.pipeline_mode<synchronous>, transform_indices = @transform_3, window_bounds = array<i64: 1, 128>}, {pipeline_mode = #tpu.pipeline_mode<synchronous>, transform_indices = @transform_4, window_bounds = array<i64: 1, 128>}, {pipeline_mode = #tpu.pipeline_mode<synchronous>, transform_indices = @transform_5, window_bounds = array<i64: 1, 128>}, {pipeline_mode = #tpu.pipeline_mode<synchronous>, transform_indices = @transform_6, window_bounds = array<i64: 1, 128>}]} {
    %c0 = arith.constant 0 : index
    %c0_0 = arith.constant 0 : index
    %0 = vector.load %arg1[%c0, %c0_0] : memref<8x128xf32, #tpu.memory_space<vmem>>, vector<8x128xf32>
    %c0_1 = arith.constant 0 : index
    %c0_2 = arith.constant 0 : index
    %1 = vector.load %arg2[%c0_1, %c0_2] : memref<128x128xf32, #tpu.memory_space<vmem>>, vector<128x128xf32>
    %cst = arith.constant dense<0.000000e+00> : vector<8x128xf32>
    %2 = tpu.matmul %0, %1, %cst {dimension_numbers = #tpu.dot_dimension_numbers<[1], [0], [0], [1], [0, 0, 1, 1], [], []>} : vector<8x128xf32>, vector<128x128xf32>, vector<8x128xf32> -> vector<8x128xf32>
    %c0_3 = arith.constant 0 : index
    %c0_4 = arith.constant 0 : index
    %3 = vector.load %arg3[%c0_3, %c0_4] : memref<1x128xf32, #tpu.memory_space<vmem>>, vector<1x128xf32>
    %4 = vector.broadcast %3 : vector<1x128xf32> to vector<8x128xf32>
    %5 = arith.addf %2, %4 : vector<8x128xf32>
    %6 = math.tanh %5 : vector<8x128xf32>
    %c0_5 = arith.constant 0 : index
    %c0_6 = arith.constant 0 : index
    %7 = vector.load %arg4[%c0_5, %c0_6] : memref<1x128xf32, #tpu.memory_space<vmem>>, vector<1x128xf32>
    %8 = vector.broadcast %7 : vector<1x128xf32> to vector<8x128xf32>
    %9 = arith.mulf %6, %8 : vector<8x128xf32>
    %cst_7 = arith.constant dense<0.000000e+00> : vector<8xf32>
    %10 = vector.multi_reduction <add>, %9, %cst_7 [1] : vector<8x128xf32> to vector<8xf32>
    %11 = vector.shape_cast %10 : vector<8xf32> to vector<8x1xf32>
    %12 = tpu.iota {dimensions = array<i32: 0>} : vector<8x1xi32>
    %c4_i32 = arith.constant 4 : i32
    %13 = vector.broadcast %c4_i32 : i32 to vector<8x1xi32>
    %14 = arith.cmpi slt, %12, %13 : vector<8x1xi32>
    %cst_8 = arith.constant -1.000000e+30 : f32
    %15 = vector.broadcast %cst_8 : f32 to vector<8x1xf32>
    %16 = arith.select %14, %11, %15 : vector<8x1xi1>, vector<8x1xf32>
    %cst_9 = arith.constant dense<0xFF800000> : vector<1xf32>
    %17 = vector.multi_reduction <maximumf>, %16, %cst_9 [0] : vector<8x1xf32> to vector<1xf32>
    %18 = vector.shape_cast %17 : vector<1xf32> to vector<1x1xf32>
    %19 = vector.broadcast %18 : vector<1x1xf32> to vector<8x1xf32>
    %20 = arith.subf %16, %19 : vector<8x1xf32>
    %21 = math.exp %20 : vector<8x1xf32>
    %cst_10 = arith.constant dense<0.000000e+00> : vector<1xf32>
    %22 = vector.multi_reduction <add>, %21, %cst_10 [0] : vector<8x1xf32> to vector<1xf32>
    %23 = vector.shape_cast %22 : vector<1xf32> to vector<1x1xf32>
    %24 = tpu.reciprocal %23 {approx = true} : vector<1x1xf32> -> vector<1x1xf32>
    %25 = vector.broadcast %24 : vector<1x1xf32> to vector<8x1xf32>
    %26 = arith.mulf %21, %25 : vector<8x1xf32>
    %27 = vector.broadcast %26 : vector<8x1xf32> to vector<8x128xf32>
    %28 = arith.mulf %27, %0 : vector<8x128xf32>
    %cst_11 = arith.constant dense<0.000000e+00> : vector<128xf32>
    %29 = vector.multi_reduction <add>, %28, %cst_11 [0] : vector<8x128xf32> to vector<128xf32>
    %30 = vector.shape_cast %29 : vector<128xf32> to vector<1x128xf32>
    %c0_12 = arith.constant 0 : index
    %c0_13 = arith.constant 0 : index
    %31 = vector.load %arg5[%c0_12, %c0_13] : memref<1x128xf32, #tpu.memory_space<vmem>>, vector<1x128xf32>
    %c0_14 = arith.constant 0 : index
    %c0_15 = arith.constant 0 : index
    %32 = vector.load %arg6[%c0_14, %c0_15] : memref<1x128xf32, #tpu.memory_space<vmem>>, vector<1x128xf32>
    %33 = tpu.iota {dimensions = array<i32: 1>} : vector<1x128xi32>
    %c32_i32 = arith.constant 32 : i32
    %34 = vector.broadcast %c32_i32 : i32 to vector<1x128xi32>
    %35 = arith.cmpi slt, %33, %34 : vector<1x128xi32>
    %36 = arith.extui %35 : vector<1x128xi1> to vector<1x128xi32>
    %37 = arith.sitofp %36 : vector<1x128xi32> to vector<1x128xf32>
    %38 = arith.mulf %30, %37 : vector<1x128xf32>
    %cst_16 = arith.constant dense<0.000000e+00> : vector<1xf32>
    %39 = vector.multi_reduction <add>, %38, %cst_16 [1] : vector<1x128xf32> to vector<1xf32>
    %40 = vector.shape_cast %39 : vector<1xf32> to vector<1x1xf32>
    %cst_17 = arith.constant 3.200000e+01 : f32
    %41 = vector.broadcast %cst_17 : f32 to vector<1x1xf32>
    %42 = arith.divf %40, %41 : vector<1x1xf32>
    %43 = vector.broadcast %42 : vector<1x1xf32> to vector<1x128xf32>
    %44 = arith.subf %30, %43 : vector<1x128xf32>
    %45 = arith.mulf %44, %37 : vector<1x128xf32>
    %46 = arith.mulf %45, %45 : vector<1x128xf32>
    %cst_18 = arith.constant dense<0.000000e+00> : vector<1xf32>
    %47 = vector.multi_reduction <add>, %46, %cst_18 [1] : vector<1x128xf32> to vector<1xf32>
    %48 = vector.shape_cast %47 : vector<1xf32> to vector<1x1xf32>
    %cst_19 = arith.constant 3.200000e+01 : f32
    %49 = vector.broadcast %cst_19 : f32 to vector<1x1xf32>
    %50 = arith.divf %48, %49 : vector<1x1xf32>
    %51 = vector.broadcast %42 : vector<1x1xf32> to vector<1x128xf32>
    %52 = arith.subf %30, %51 : vector<1x128xf32>
    %cst_20 = arith.constant 9.99999974E-6 : f32
    %53 = vector.broadcast %cst_20 : f32 to vector<1x1xf32>
    %54 = arith.addf %50, %53 : vector<1x1xf32>
    %55 = math.rsqrt %54 : vector<1x1xf32>
    %56 = vector.broadcast %55 : vector<1x1xf32> to vector<1x128xf32>
    %57 = arith.mulf %52, %56 : vector<1x128xf32>
    %58 = arith.mulf %57, %31 : vector<1x128xf32>
    %59 = arith.addf %58, %32 : vector<1x128xf32>
    %c0_21 = arith.constant 0 : index
    %c0_22 = arith.constant 0 : index
    %60 = vector.load %arg7[%c0_21, %c0_22] : memref<1x128xf32, #tpu.memory_space<vmem>>, vector<1x128xf32>
    tpu.vector_store %arg7[%c0_21, %c0_22], %59 {strides = array<i32>} : memref<1x128xf32, #tpu.memory_space<vmem>>, vector<1x128xf32>,
    return
  }
  func.func @transform_0(%arg0: i32) -> (i32, i32) {
    %c0_i32 = arith.constant 0 : i32
    %c0_i32_0 = arith.constant 0 : i32
    %c0_i32_1 = arith.constant 0 : i32
    return %c0_i32, %c0_i32_0 : i32, i32
  }
  func.func @transform_1(%arg0: i32) -> (i32, i32) {
    %c0_i32 = arith.constant 0 : i32
    %c0_i32_0 = arith.constant 0 : i32
    %c0_i32_1 = arith.constant 0 : i32
    return %c0_i32, %c0_i32_0 : i32, i32
  }
  func.func @transform_2(%arg0: i32) -> (i32, i32) {
    %c0_i32 = arith.constant 0 : i32
    %c0_i32_0 = arith.constant 0 : i32
    %c0_i32_1 = arith.constant 0 : i32
    return %c0_i32, %c0_i32_0 : i32, i32
  }
  func.func @transform_3(%arg0: i32) -> (i32, i32) {
    %c0_i32 = arith.constant 0 : i32
    %c0_i32_0 = arith.constant 0 : i32
    %c0_i32_1 = arith.constant 0 : i32
    return %c0_i32, %c0_i32_0 : i32, i32
  }
  func.func @transform_4(%arg0: i32) -> (i32, i32) {
    %c0_i32 = arith.constant 0 : i32
    %c0_i32_0 = arith.constant 0 : i32
    %c0_i32_1 = arith.constant 0 : i32
    return %c0_i32, %c0_i32_0 : i32, i32
  }
  func.func @transform_5(%arg0: i32) -> (i32, i32) {
    %c0_i32 = arith.constant 0 : i32
    %c0_i32_0 = arith.constant 0 : i32
    %c0_i32_1 = arith.constant 0 : i32
    return %c0_i32, %c0_i32_0 : i32, i32
  }
  func.func @transform_6(%arg0: i32) -> (i32, i32) {
    %c0_i32 = arith.constant 0 : i32
    %c0_i32_0 = arith.constant 0 : i32
    %c0_i32_1 = arith.constant 0 : i32
    return %c0_i32, %c0_i32_0 : i32, i32
  }
}

</mosaic_0001>

<bundles_post_ra>
// kernel: user_encoder_forward.3
= control target key start
LH: loop header
LB: loop body
LE: loop exit
PB: predicated region body
PF: predicated region fallthrough
CT: control target
= control target key end

     0   :  { %v310_v3 = vmov 0.0|0.0   ;;  %vm311_vm0 = vmmov 0   ;;  %v312_v6 = vmov 0.0   ;;  %s426_s0 = inlined_call_operand.vmem [shape: f32[8,128], index: 0, kind: input, shape index: {}]   ;;  %s427_s1 = inlined_call_operand.vmem [shape: f32[128,128], index: 1, kind: input, shape index: {}]   ;;  %s428_s2 = inlined_call_operand.vmem [shape: f32[1,128], index: 2, kind: input, shape index: {}]   ;;  %s429_s3 = inlined_call_operand.vmem [shape: f32[1,128], index: 3, kind: input, shape index: {}]   ;;  %s430_s4 = inlined_call_operand.vmem [shape: f32[1,128], index: 4, kind: input, shape index: {}]   ;;  %s431_s5 = inlined_call_operand.vmem [shape: f32[1,128], index: 5, kind: input, shape index: {}]   ;;  %s432_s6 = inlined_call_operand.hbm [shape: f32[1,128], index: 6, kind: output, shape index: {}]  }
   0x1   :  { %v25_v0 = vld [vmem:[%s427_s1] sm:$0xff]  ;;  %v26_v1 = vld [vmem:[%s427_s1 + $0x8] sm:$0xff]  ;;  %v27_v2 = vld [vmem:[%s427_s1 + $0x10] sm:$0xff]  ;;  %250 = vmatprep.subr.bf16.mxu0 %v310_v3  ;;  %247 = vmatprep.mubr.msk.f32.mxu0 %vm311_vm0, %v312_v6 }
   0x2   :  { %v251_v4 = vpack.c.bf16 %v26_v1, %v25_v0  ;;  %v28_v5 = vld [vmem:[%s427_s1 + $0x18] sm:$0xff]  ;;  %v29_v8 = vld [vmem:[%s427_s1 + $0x20] sm:$0xff]  ;;  %v30_v9 = vld [vmem:[%s427_s1 + $0x28] sm:$0xff] }
   0x3   :  { %v254_v7 = vpack.c.bf16 %v28_v5, %v27_v2 }
   0x4   :  { %252 = vmatpush3.bf16.msra.mxu0 %v251_v4 }
   0x5   :  { %253 = vmatprep.subr.bf16.mxu0 %v310_v3 }
   0x6   :  { %11 = vsyncpa [#allocation3], 0  ;;  %v257_v10 = vpack.c.bf16 %v30_v9, %v29_v8  ;;  %v31_v11 = vld [vmem:[%s427_s1 + $0x30] sm:$0xff]  ;;  %v32_v12 = vld [vmem:[%s427_s1 + $0x38] sm:$0xff]  ;;  %v129_v34 = vlaneseq  ;;  %s313_s11 = smov [#allocation2]  }
   0x7   :  { %v260_v13 = vpack.c.bf16 %v32_v12, %v31_v11  ;;  %v33_v14 = vld [vmem:[%s427_s1 + $0x40] sm:$0xff]  ;;  %v34_v15 = vld [vmem:[%s427_s1 + $0x48] sm:$0xff]  ;;  %v35_v17 = vld [vmem:[%s427_s1 + $0x50] sm:$0xff]  ;;  %s187_s12 = sshll.u32 %s313_s11, 4  ;;  %s188_s12 = int_to_ptr.vmem [resolvable:$true] %s187_s12 }
   0x8   :  { %255 = vmatpush3.bf16.msra.mxu0 %v254_v7  ;;  %v263_v16 = vpack.c.bf16 %v34_v15, %v33_v14  ;;  %v36_v18 = vld [vmem:[%s427_s1 + $0x58] sm:$0xff]  ;;  %v37_v20 = vld [vmem:[%s427_s1 + $0x60] sm:$0xff]  ;;  %v38_v21 = vld [vmem:[%s427_s1 + $0x68] sm:$0xff]  ;;  %v130_v35 = vshrl.u32 %v129_v34, 7  ;;  %v160_v57 = vand.u32 127, %v129_v34  ;;  %s286_s13 = scalar_lea.vmem %s188_s12, 16  ;;  %p291_p1 = scmp.lt.s32.totalorder %s188_s12, %s188_s12 }
   0x9   :  { %256 = vmatprep.subr.bf16.mxu0 %v310_v3  ;;  %v266_v19 = vpack.c.bf16 %v36_v18, %v35_v17  ;;  %v269_v22 = vpack.c.bf16 %v38_v21, %v37_v20  ;;  %v39_v23 = vld [vmem:[%s427_s1 + $0x70] sm:$0xff]  ;;  %v40_v24 = vld [vmem:[%s427_s1 + $0x78] sm:$0xff]  ;;  %v24_v26 = vld [vmem:[%s426_s0] sm:$0xff]  ;;  %p287_p0 = scmp.ne.s32.totalorder %s188_s12, %s286_s13  ;;  %s290_s14 = scalar_lea.vmem %s188_s12, 32 }
   0xa   :  { %v272_v25 = vpack.c.bf16 %v40_v24, %v39_v23  ;;  %v195_v27 = vld [vmem:[%s428_s2] ss:$0 sm:$0xff]  ;;  %vm131_vm1 = vcmp.lt.s32.totalorder %v130_v35, 4  ;;  %vm161_vm2 = vcmp.lt.s32.totalorder %v160_v57, 32  ;;  %p292_p2 = scmp.lt.s32.totalorder %s290_s14, %s286_s13 }
   0xb   :  { %v196_v31 = vld [vmem:[%s429_s3] ss:$0 sm:$0xff]  ;;  %v197_v62 = vsel %vm161_vm2, 1.0, %v312_v6 }
   0xc   :  { %258 = vmatpush3.bf16.msra.mxu0 %v257_v10  ;;  %v157_v11 = vld [vmem:[%s430_s4] sm:$0x1]  ;;  %p293_p3 = por %p292_p2, %p291_p1 }
   0xd   :  { %259 = vmatprep.subr.bf16.mxu0 %v310_v3  ;;  %v158_v6 = vld [vmem:[%s431_s5] sm:$0x1] }
   0xe   :  { %p294_p4 = pnand %p293_p3, %p287_p0 }
  0x10   :  { %261 = vmatpush3.bf16.msra.mxu0 %v260_v13 }
  0x11   :  { %262 = vmatprep.subr.bf16.mxu0 %v310_v3 }
  0x14   :  { %264 = vmatpush3.bf16.msra.mxu0 %v263_v16 }
  0x15   :  { %265 = vmatprep.subr.bf16.mxu0 %v310_v3 }
  0x18   :  { %267 = vmatpush3.bf16.msra.mxu0 %v266_v19 }
  0x19   :  { %268 = vmatprep.subr.bf16.mxu0 %v310_v3 }
  0x1c   :  { %270 = vmatpush3.bf16.msra.mxu0 %v269_v22 }
  0x1d   :  { %271 = vmatprep.subr.bf16.mxu0 %v310_v3 }
  0x20   :  { %273 = vmatpush3.bf16.msra.mxu0 %v272_v25 }
  0x23   :  { %248 = vmatmul.mubr.f32.vlgmr.msra.gmra.mrb[0].mxu0 %v24_v26 }
  0xf6   :  { %v114_v28 = vpop.f32.mrb[0].mxu0 }
  0xf7   :  { %v115_v29 = vadd.f32 %v195_v27, %v114_v28  ;;  %v249_v30 = vpop.f32.mrb[1].mxu0 }
  0xf9   :  { %278 = vtanh.f32 %v115_v29 }
 0x103   :  { %v279_v32 = vpop.eup %278 }
 0x104   :  { %v126_v33 = vmul.f32 %v279_v32, %v196_v31 }
 0x106   :  { %127 = vadd.xlane.f32.xlu0 %v126_v33 }
 0x193   :  { %v128_v36 = vpop.xlane.xlu0 %127 }
 0x194   :  { %v132_v37 = vsel %vm131_vm1, %v128_v36, -1e+30 }
 0x195   :  { %v133_v38 = vrot.slane %v132_v37, 4 }
 0x197   :  { %v134_v39 = vmax.f32 %v132_v37, %v133_v38 }
 0x199   :  { %v135_v40 = vrot.slane %v134_v39, 2 }
 0x19b   :  { %v136_v41 = vmax.f32 %v134_v39, %v135_v40 }
 0x19d   :  { %v137_v42 = vrot.slane %v136_v41, 1 }
 0x19f   :  { %v138_v43 = vmax.f32 %v136_v41, %v137_v42 }
 0x1a1   :  { %v139_v44 = vsub.f32 %v132_v37, %v138_v43 }
 0x1a3   :  { %v140_v45 = vmul.f32 1.442695, %v139_v44 }
 0x1a5   :  { %280 = vpow2.f32 %v140_v45 }
 0x1af   :  { %v281_v46 = vpop.eup %280 }
 0x1b0   :  { %v142_v47 = vrot.slane %v281_v46, 4 }
 0x1b2   :  { %v143_v48 = vadd.f32 %v281_v46, %v142_v47 }
 0x1b4   :  { %v144_v49 = vrot.slane %v143_v48, 2 }
 0x1b6   :  { %v145_v50 = vadd.f32 %v144_v49, %v143_v48 }
 0x1b8   :  { %v146_v51 = vrot.slane %v145_v50, 1 }
 0x1ba   :  { %v147_v52 = vadd.f32 %v146_v51, %v145_v50 }
 0x1bc   :  { %282 = vrcp.f32 %v147_v52 }
 0x1c6   :  { %v283_v53 = vpop.eup %282 }
 0x1c7   :  { %v149_v54 = vmul.f32 %v283_v53, %v281_v46 }
 0x1c9   :  { %v150_v55 = vmul.f32 %v149_v54, %v24_v26 }
 0x1cb   :  { %v151_v56 = vrot.slane %v150_v55, 4 }
 0x1cd   :  { %v152_v58 = vadd.f32 %v151_v56, %v150_v55 }
 0x1cf   :  { %v153_v59 = vrot.slane %v152_v58, 2 }
 0x1d1   :  { %v154_v60 = vadd.f32 %v153_v59, %v152_v58 }
 0x1d3   :  { %v155_v61 = vrot.slane %v154_v60, 1 }
 0x1d5   :  { %v156_v63 = vadd.f32 %v155_v61, %v154_v60 }
 0x1d7   :  { %v164_v0 = vmul.f32 %v197_v62, %v156_v63 }
 0x1d9   :  { %165 = vadd.xlane.f32.xlu0 %v164_v0 }
 0x266   :  { %v166_v1 = vpop.xlane.xlu0 %165 }
 0x267   :  { %v168_v2 = vmul.f32 0.03125, %v166_v1 }
 0x269   :  { %v169_v3 = vsub.f32 %v156_v63, %v168_v2 }
 0x26b   :  { %v170_v4 = vmul.f32 %v197_v62, %v169_v3 }
 0x26d   :  { %v171_v5 = vmul.f32 %v170_v4, %v170_v4 }
 0x26f   :  { %172 = vadd.xlane.f32.xlu1 %v171_v5 }
 0x2fc   :  { %v173_v7 = vpop.xlane.xlu1 %172 }
 0x2fd   :  { %v174_v8 = vmul.f32 0.03125, %v173_v7 }
 0x2ff   :  { %v175_v9 = vadd.f32 1e-05, %v174_v8 }
 0x301   :  { %284 = vrsqrt.f32 %v175_v9 }
 0x30b   :  { %v285_v10 = vpop.eup %284 }
 0x30c   :  { %v177_v12 = vmul.f32 %v285_v10, %v169_v3 }
 0x30e   :  { %v178_v13 = vmul.f32 %v177_v12, %v157_v11 }
 0x310   :  { %v179_v14 = vadd.f32 %v178_v13, %v158_v6 }
 0x312   :  { %180 = vst [vmem:[#allocation2] sm:$0x1] %v179_v14 }
 0x313   :  { %297 = shalt.err (!%p294_p4)
}
 0x314   :  { %s298_s16 = scalar_lea.hbm %s432_s6, 16 }
 0x315   :  { %p299_p5 = scmp.ne.s32.totalorder %s432_s6, %s298_s16  ;;  %p302_p6 = scmp.lt.u32.totalorder %s298_s16, %s432_s6 }
 0x317   :  { %p304_p7 = pnand %p302_p6, %p299_p5 }
 0x319   :  { %307 = shalt.err (!%p304_p7)
}
 0x31a   :  { %190 = dma.vmem_to_hbm [thread:$0]  %s188_s12, 16, %s432_s6, [#allocation3]  }
 0x31b   :  { %308 = dma.done.wait [#allocation3], 16  }
 0x31c   :  { %309 = vsyncadd [#allocation3], 4294967280 }
 0x31d   :  { %194 = vsyncpa [#allocation3], 1 }

// kernel: user_encoder_forward.2
= control target key start
LH: loop header
LB: loop body
LE: loop exit
PB: predicated region body
PF: predicated region fallthrough
CT: control target
= control target key end

     0   :  { %vm50_vm0 = vsmask.f32 3328  ;;  %vm51_vm1 = vsmask.f32 7440  ;;  %vm194_vm2 = vcmask 261120   ;;  %vm389_vm4 = vcmask 1042432   ;;  %s1807_s1 = inlined_call_operand.vmem [shape: bf16[3,32,128], index: 1, kind: input, shape index: {}]   ;;  %s1808_s0 = inlined_call_operand.vmem [shape: bf16[8,10,32], index: 0, kind: input, shape index: {}]   ;;  %s1809_s3 = inlined_call_operand.vmem [shape: bf16[128,128], index: 3, kind: input, shape index: {}]   ;;  %s1810_s2 = inlined_call_operand.vmem [shape: f32[1,128], index: 2, kind: input, shape index: {}]   ;;  %s1811_s4 = inlined_call_operand.vmem [shape: f32[1,128], index: 4, kind: input, shape index: {}]   ;;  %s1812_s5 = inlined_call_operand.vmem [shape: f32[1,1,128], index: 5, kind: input, shape index: {}]   ;;  %s1813_s6 = inlined_call_operand.vmem [shape: f32[1,128], index: 6, kind: input, shape index: {}]   ;;  %s1814_s7 = inlined_call_operand.vmem [shape: f32[1,128], index: 7, kind: input, shape index: {}]   ;;  %s1815_s8 = inlined_call_operand.vmem [shape: f32[8,128], index: 8, kind: output, shape index: {}]  }
   0x1   :  { %v1307_v0 = vld [vmem:[%s1807_s1 + $0x10] sm:$0xff]   ;;  %v1308_v1 = vld [vmem:[%s1807_s1 + $0x18] sm:$0xff]   ;;  %v1430_v2 = vld [vmem:[%s1808_s0] sm:$0xf]  ;;  %vm390_vm5 = vcmask 1046532   ;;  %vm967_vm8 = vcmask 1041409  }
   0x2   :  { %1230 = vmatprep.subr.bf16.mxu0 %v1307_v0  ;;  %v1435_v3 = vld [vmem:[%s1808_s0 + $0x4] sm:$0x1]  ;;  %v1440_v4 = vld [vmem:[%s1808_s0 + $0x8] sm:$0xf]  ;;  %v1445_v5 = vld [vmem:[%s1808_s0 + $0xc] sm:$0x1] }
   0x3   :  { %1231 = vmatpush3.bf16.msra.mxu0 %v1307_v0  ;;  %v54_v6 = vshrl.u32 %v1430_v2, 16  ;;  %v57_v7 = vshll.u32 %v1430_v2, 16  ;;  %v63_v8 = vshll.u32 %v1435_v3, 16  ;;  %v68_v9 = vshrl.u32 %v1440_v4, 16  ;;  %v1456_v18 = vld [vmem:[%s1807_s1] sm:$0xff]   ;;  %vm1480_vm3 = vmor %vm50_vm0, %vm51_vm1  ;;  %v1322_v24 = vld [vmem:[%s1809_s3 + $0x28] sm:$0xff]  }
   0x4   :  { %1232 = vmatprep.subr.bf16.mxu0 %v1308_v1  ;;  %v71_v10 = vshll.u32 %v1440_v4, 16  ;;  %v77_v11 = vshll.u32 %v1445_v5, 16  ;;  %v1461_v19 = vld [vmem:[%s1808_s0 + $0x10] sm:$0xf]  ;;  %v1466_v21 = vld [vmem:[%s1808_s0 + $0x14] sm:$0x1]  ;;  %vm1602_vm6 = vmor %vm389_vm4, %vm390_vm5 }
   0x5   :  { %v56_v12 = vrot.slane %v54_v6, 4  ;;  %v59_v13 = vrot.slane %v57_v7, 5  ;;  %v70_v14 = vrot.slane %v68_v9, 4  ;;  %v65_v15 = vrot.slane %v63_v8, 5  ;;  %v1471_v22 = vld [vmem:[%s1808_s0 + $0x18] sm:$0xf] }
   0x6   :  { %v73_v16 = vrot.slane %v71_v10, 5  ;;  %v79_v17 = vrot.slane %v77_v11, 5  ;;  %v1476_v23 = vld [vmem:[%s1808_s0 + $0x1c] sm:$0x1]  ;;  %v82_v26 = vshrl.u32 %v1461_v19, 16  ;;  %v85_v27 = vshll.u32 %v1461_v19, 16 }
   0x7   :  { %1233 = vmatpush3.bf16.msra.mxu0 %v1308_v1  ;;  %v60_v20 = vor.u32 %v59_v13, %v56_v12  ;;  %v91_v28 = vshll.u32 %v1466_v21, 16  ;;  %v96_v30 = vshrl.u32 %v1471_v22, 16  ;;  %v99_v31 = vshll.u32 %v1471_v22, 16  ;;  %v1494_v33 = vld [vmem:[%s1808_s0 + $0x20] sm:$0xf]  ;;  %v1310_v7 = vld [vmem:[%s1807_s1 + $0x8] sm:$0xff]  }
   0x8   :  { %v74_v25 = vor.u32 %v73_v16, %v70_v14  ;;  %1242 = vmatprep.subr.bf16.mxu0 %v1456_v18  ;;  %v105_v32 = vshll.u32 %v1476_v23, 16  ;;  %v84_v35 = vrot.slane %v82_v26, 4  ;;  %v87_v36 = vrot.slane %v85_v27, 5  ;;  %v1499_v38 = vld [vmem:[%s1808_s0 + $0x24] sm:$0x1] }
   0x9   :  { %v61_v29 = vrot.slane %v60_v20, 4  ;;  %v93_v37 = vrot.slane %v91_v28, 5  ;;  %v98_v40 = vrot.slane %v96_v30, 4  ;;  %v101_v41 = vrot.slane %v99_v31, 5  ;;  %v1506_v43 = vld [vmem:[%s1808_s0 + $0x28] sm:$0xf] }
   0xa   :  { %v75_v34 = vrot.slane %v74_v25, 4  ;;  %v107_v42 = vrot.slane %v105_v32, 5  ;;  %v88_v45 = vor.u32 %v87_v36, %v84_v35  ;;  %v1513_v46 = vld [vmem:[%s1808_s0 + $0x2c] sm:$0x1]  ;;  %v110_v49 = vshrl.u32 %v1494_v33, 16  ;;  %v1317_v8 = vld [vmem:[%s1809_s3] sm:$0xff]  }
   0xb   :  { %v66_v39 = vsel %vm1480_vm3, %v61_v29, %v65_v15  ;;  %v102_v48 = vor.u32 %v101_v41, %v98_v40  ;;  %v113_v50 = vshll.u32 %v1494_v33, 16  ;;  %v1520_v51 = vld [vmem:[%s1808_s0 + $0x30] sm:$0xf]  ;;  %v1525_v52 = vld [vmem:[%s1808_s0 + $0x34] sm:$0x1]  ;;  %v119_v54 = vshll.u32 %v1499_v38, 16  ;;  %1266 = vmatprep.subr.bf16.mxu1 %v1317_v8 }
   0xc   :  { %v80_v44 = vsel %vm1480_vm3, %v75_v34, %v79_v17  ;;  %v89_v53 = vrot.slane %v88_v45, 4  ;;  %v124_v55 = vshrl.u32 %v1506_v43, 16  ;;  %v127_v56 = vshll.u32 %v1506_v43, 16  ;;  %v1533_v57 = vld [vmem:[%s1808_s0 + $0x38] sm:$0xf]  ;;  %1267 = vmatpush3.bf16.msra.mxu1 %v1317_v8  ;;  %v1318_v34 = vld [vmem:[%s1809_s3 + $0x8] sm:$0xff]  }
   0xd   :  { %v1144_v47 = vcombine.low %v66_v39, %v80_v44  ;;  %v103_v58 = vrot.slane %v102_v48, 4  ;;  %v112_v59 = vrot.slane %v110_v49, 4  ;;  %v115_v60 = vrot.slane %v113_v50, 5  ;;  %v1540_v62 = vld [vmem:[%s1808_s0 + $0x3c] sm:$0x1]  ;;  %v1312_v39 = vld [vmem:[%s1807_s1 + $0x20] sm:$0xff]   ;;  %1268 = vmatprep.subr.bf16.mxu1 %v1318_v34 }
   0xe   :  { %v133_v61 = vshll.u32 %v1513_v46, 16  ;;  %v94_v63 = vsel %vm1480_vm3, %v89_v53, %v93_v37  ;;  %v121_v0 = vrot.slane %v119_v54, 5  ;;  %v126_v1 = vrot.slane %v124_v55, 4  ;;  %v1321_v54 = vld [vmem:[%s1809_s3 + $0x20] sm:$0xff]  }
   0xf   :  { %1234 = vmatprep.mubr.msk.bf16.mxu0 %vm194_vm2, %v1144_v47  ;;  %v129_v6 = vrot.slane %v127_v56, 5  ;;  %v108_v9 = vsel %vm1480_vm3, %v103_v58, %v107_v42  ;;  %v116_v10 = vor.u32 %v115_v60, %v112_v59  ;;  %v138_v12 = vshrl.u32 %v1520_v51, 16  ;;  %v1319_v42 = vld [vmem:[%s1809_s3 + $0x10] sm:$0xff]   ;;  %v1320_v47 = vld [vmem:[%s1809_s3 + $0x18] sm:$0xff]   ;;  %v1315_v60 = vld [vmem:[%s1807_s1 + $0x28] sm:$0xff]  }
  0x10   :  { %v135_v11 = vrot.slane %v133_v61, 5  ;;  %v1145_v13 = vcombine.low %v94_v63, %v108_v9  ;;  %v141_v15 = vshll.u32 %v1520_v51, 16  ;;  %v147_v16 = vshll.u32 %v1525_v52, 16  ;;  %1269 = vmatpush3.bf16.msra.mxu1 %v1318_v34 }
  0x11   :  { %v130_v14 = vor.u32 %v129_v6, %v126_v1  ;;  %v117_v17 = vrot.slane %v116_v10, 4  ;;  %v140_v20 = vrot.slane %v138_v12, 4  ;;  %v152_v25 = vshrl.u32 %v1533_v57, 16  ;;  %1270 = vmatprep.subr.bf16.mxu1 %v1319_v42 }
  0x12   :  { %v155_v26 = vshll.u32 %v1533_v57, 16  ;;  %1235 = vmatmul.mubr.msk.bf16.vlgmr.msra.gmra.mrb[0].mxu0 %vm194_vm2, %v1145_v13  ;;  %v143_v28 = vrot.slane %v141_v15, 5  ;;  %v161_v29 = vshll.u32 %v1540_v62, 16  ;;  %v149_v37 = vrot.slane %v147_v16, 5 }
  0x13   :  { %v131_v27 = vrot.slane %v130_v14, 4  ;;  %1243 = vmatpush3.bf16.msra.mxu0 %v1456_v18  ;;  %v122_v30 = vsel %vm1480_vm3, %v117_v17, %v121_v0  ;;  %v154_v31 = vrot.slane %v152_v25, 4  ;;  %v1154_v50 = vcombine.low %v1430_v2, %v1440_v4 }
  0x14   :  { %v157_v32 = vrot.slane %v155_v26, 5  ;;  %1244 = vmatprep.subr.bf16.mxu0 %v1310_v7  ;;  %v144_v36 = vor.u32 %v143_v28, %v140_v20  ;;  %v163_v41 = vrot.slane %v161_v29, 5  ;;  %1271 = vmatpush3.bf16.msra.mxu1 %v1319_v42  ;;  %v1155_v55 = vcombine.low %v1461_v19, %v1471_v22 }
  0x15   :  { %v136_v35 = vsel %vm1480_vm3, %v131_v27, %v135_v11  ;;  %1272 = vmatprep.subr.bf16.mxu1 %v1320_v47  ;;  %v1156_v56 = vcombine.low %v1494_v33, %v1506_v43  ;;  %v394_v58 = vrot.slane %v1435_v3, 5  ;;  %v398_v59 = vrot.slane %v1445_v5, 5 }
  0x16   :  { %v1146_v18 = vcombine.low %v122_v30, %v136_v35  ;;  %v158_v40 = vor.u32 %v157_v32, %v154_v31  ;;  %v145_v44 = vrot.slane %v144_v36, 4  ;;  %v1164_v61 = vrot.slane %v1430_v2, 9 }
  0x17   :  { %1245 = vmatpush3.bf16.msra.mxu0 %v1310_v7  ;;  %v1165_v63 = vrot.slane %v1440_v4, 9  ;;  %v402_v4 = vrot.slane %v1466_v21, 5  ;;  %v1157_v5 = vcombine.low %v1520_v51, %v1533_v57  ;;  %v406_v1 = vrot.slane %v1476_v23, 5 }
  0x18   :  { %1238 = vmatprep.mubr.msk.bf16.mxu0 %vm194_vm2, %v1146_v18  ;;  %v159_v45 = vrot.slane %v158_v40, 4  ;;  %v150_v48 = vsel %vm1480_vm3, %v145_v44, %v149_v37  ;;  %1254 = vmatprep.subr.bf16.mxu0 %v1312_v39  ;;  %v395_v3 = vsel %vm1602_vm6, %v1164_v61, %v394_v58  ;;  %v1166_v7 = vrot.slane %v1461_v19, 9 }
  0x19   :  { %1273 = vmatpush3.bf16.msra.mxu1 %v1320_v47  ;;  %v399_v2 = vsel %vm1602_vm6, %v1165_v63, %v398_v59  ;;  %v1167_v8 = vrot.slane %v1471_v22, 9  ;;  %v1168_v9 = vrot.slane %v1494_v33, 9  ;;  %v410_v10 = vrot.slane %v1499_v38, 5 }
  0x1a   :  { %v164_v49 = vsel %vm1480_vm3, %v159_v45, %v163_v41  ;;  %1274 = vmatprep.subr.bf16.mxu1 %v1321_v54  ;;  %v1176_v6 = vcombine.low %v395_v3, %v399_v2  ;;  %v1169_v11 = vrot.slane %v1506_v43, 9  ;;  %v414_v12 = vrot.slane %v1513_v46, 5 }
  0x1b   :  { %v1147_v53 = vcombine.low %v150_v48, %v164_v49  ;;  %v403_v21 = vsel %vm1602_vm6, %v1166_v7, %v402_v4  ;;  %v407_v19 = vsel %vm1602_vm6, %v1167_v8, %v406_v1  ;;  %v411_v22 = vsel %vm1602_vm6, %v1168_v9, %v410_v10  ;;  %v1196_v8 = vld [vmem:[%s1812_s5] ss:$0 sm:$0xff] }
  0x1c   :  { %v415_v23 = vsel %vm1602_vm6, %v1169_v11, %v414_v12  ;;  %v1177_v33 = vcombine.low %v403_v21, %v407_v19  ;;  %v1170_v38 = vrot.slane %v1520_v51, 9  ;;  %v418_v46 = vrot.slane %v1525_v52, 5  ;;  %v1323_v51 = vld [vmem:[%s1809_s3 + $0x30] sm:$0xff]   ;;  %v1324_v52 = vld [vmem:[%s1809_s3 + $0x38] sm:$0xff]  }
  0x1d   :  { %1239 = vmatmul.mubr.msk.bf16.gmra.mrb[4].mxu0 %vm194_vm2, %v1147_v53  ;;  %1275 = vmatpush3.bf16.msra.mxu1 %v1321_v54  ;;  %v1178_v43 = vcombine.low %v411_v22, %v415_v23  ;;  %v1171_v13 = vrot.slane %v1533_v57, 9  ;;  %v422_v14 = vrot.slane %v1540_v62, 5  ;;  %v1186_v57 = vld [vmem:[%s1810_s2] ss:$0 sm:$0xff]  ;;  %vm970_vm9 = vcmask 1042434  }
  0x1e   :  { %1246 = vmatprep.mubr.msk.bf16.mxu0 %vm194_vm2, %v1154_v50  ;;  %1276 = vmatprep.subr.bf16.mxu1 %v1322_v24  ;;  %v419_v15 = vsel %vm1602_vm6, %v1170_v38, %v418_v46  ;;  %vm973_vm10 = vcmask 1043459   ;;  %vm976_vm11 = vcmask 1044484   ;;  %vm979_vm12 = vcmask 1045509  }
  0x1f   :  { %v423_v16 = vsel %vm1602_vm6, %v1171_v13, %v422_v14  ;;  %vm982_vm13 = vcmask 1046534   ;;  %vm985_vm14 = vcmask 1047559  }
  0x20   :  { %v1179_v17 = vcombine.low %v419_v15, %v423_v16 }
  0x21   :  { %1277 = vmatpush3.bf16.msra.mxu1 %v1322_v24 }
  0x22   :  { %1278 = vmatprep.subr.bf16.mxu1 %v1323_v51 }
  0x25   :  { %1247 = vmatmul.mubr.msk.bf16.vlgmr.msra.gmra.mrb[0].mxu0 %vm194_vm2, %v1155_v55  ;;  %1279 = vmatpush3.bf16.msra.mxu1 %v1323_v51  ;;  %v1187_v55 = vld [vmem:[%s1811_s4] ss:$0 sm:$0xff] }
  0x26   :  { %1255 = vmatpush3.bf16.msra.mxu0 %v1312_v39  ;;  %1250 = vmatprep.mubr.msk.bf16.mxu0 %vm194_vm2, %v1156_v56 }
  0x27   :  { %1256 = vmatprep.subr.bf16.mxu0 %v1315_v60  ;;  %1280 = vmatprep.subr.bf16.mxu1 %v1324_v52 }
  0x29   :  { %1281 = vmatpush3.bf16.msra.mxu1 %v1324_v52 }
  0x2a   :  { %1257 = vmatpush3.bf16.msra.mxu0 %v1315_v60 }
  0x2d   :  { %1251 = vmatmul.mubr.msk.bf16.gmra.mrb[4].mxu0 %vm194_vm2, %v1157_v5 }
  0x2e   :  { %1258 = vmatprep.mubr.msk.bf16.mxu0 %vm194_vm2, %v1176_v6 }
  0x35   :  { %1259 = vmatmul.mubr.msk.bf16.vlgmr.msra.gmra.mrb[0].mxu0 %vm194_vm2, %v1177_v33 }
  0x36   :  { %1262 = vmatprep.mubr.msk.bf16.mxu0 %vm194_vm2, %v1178_v43 }
  0x3d   :  { %1263 = vmatmul.mubr.msk.bf16.gmra.mrb[4].mxu0 %vm194_vm2, %v1179_v17 }
 0x108   :  { %v1260_v62 = vpop.f32.mrb[0].mxu0 }
 0x109   :  { %v499_v20 = vpop.f32.mrb[1].mxu0  ;;  %v1654_v27 = vadd.f32 %v1260_v62, %v1186_v57 }
 0x10a   :  { %v1652_v25 = vadd.f32 %v1186_v57, %v499_v20  ;;  %v1261_v26 = vpop.f32.mrb[2].mxu0 }
 0x10b   :  { %v1656_v28 = vadd.f32 %v1261_v26, %v1186_v57  ;;  %v502_v29 = vpop.f32.mrb[3].mxu0  ;;  %v555_v35 = vmax.f32 %v1654_v27, 0.0 }
 0x10c   :  { %v1658_v30 = vadd.f32 %v1186_v57, %v502_v29  ;;  %v553_v32 = vmax.f32 %v1652_v25, 0.0 }
 0x10d   :  { %v556_v31 = vmax.f32 %v1656_v28, 0.0 }
 0x10e   :  { %v554_v34 = vmax.f32 %v1658_v30, 0.0 }
 0x10f   :  { %v562_v39 = vpack.c.bf16 %v556_v31, %v555_v35 }
 0x110   :  { %v1264_v36 = vpop.f32.mrb[4].mxu0  ;;  %v561_v37 = vpack.c.bf16 %v554_v34, %v553_v32 }
 0x111   :  { %v515_v18 = vpop.f32.mrb[5].mxu0  ;;  %v1674_v42 = vadd.f32 %v1264_v36, %v1186_v57 }
 0x112   :  { %v1672_v40 = vadd.f32 %v1186_v57, %v515_v18  ;;  %v1265_v41 = vpop.f32.mrb[6].mxu0  ;;  %1282 = vmatprep.mubr.bf16.mxu1 %v561_v37 }
 0x113   :  { %v1676_v44 = vadd.f32 %v1265_v41, %v1186_v57  ;;  %v518_v45 = vpop.f32.mrb[7].mxu0  ;;  %1283 = vmatmul.mubr.bf16.vlgmr.msra.gmra.mrb[0].mxu1 %v562_v39  ;;  %v559_v53 = vmax.f32 %v1674_v42, 0.0 }
 0x114   :  { %v1678_v47 = vadd.f32 %v1186_v57, %v518_v45  ;;  %v557_v49 = vmax.f32 %v1672_v40, 0.0 }
 0x115   :  { %v560_v48 = vmax.f32 %v1676_v44, 0.0 }
 0x116   :  { %v558_v50 = vmax.f32 %v1678_v47, 0.0  ;;  %v1375_v47 = vmov 0.0  }
 0x117   :  { %v564_v24 = vpack.c.bf16 %v560_v48, %v559_v53 }
 0x118   :  { %v563_v54 = vpack.c.bf16 %v558_v50, %v557_v49 }
 0x11a   :  { %1286 = vmatprep.mubr.bf16.mxu1 %v563_v54 }
 0x11b   :  { %1287 = vmatmul.mubr.bf16.gmra.mrb[4].mxu1 %v564_v24 }
 0x1e6   :  { %v1284_v56 = vpop.f32.mrb[0].mxu1 }
 0x1e7   :  { %v679_v58 = vadd.f32 %v1284_v56, %v1187_v55  ;;  %v670_v59 = vpop.f32.mrb[1].mxu1 }
 0x1e8   :  { %v671_v60 = vadd.f32 %v1187_v55, %v670_v59  ;;  %v1285_v61 = vpop.f32.mrb[2].mxu1 }
 0x1e9   :  { %1325 = vtanh.f32 %v679_v58  ;;  %v682_v63 = vadd.f32 %v1285_v61, %v1187_v55  ;;  %v673_v0 = vpop.f32.mrb[3].mxu1 }
 0x1ea   :  { %1327 = vtanh.f32 %v671_v60  ;;  %v674_v3 = vadd.f32 %v1187_v55, %v673_v0 }
 0x1eb   :  { %1329 = vtanh.f32 %v682_v63 }
 0x1ec   :  { %1331 = vtanh.f32 %v674_v3 }
 0x1ee   :  { %v1288_v2 = vpop.f32.mrb[4].mxu1 }
 0x1ef   :  { %v695_v4 = vadd.f32 %v1288_v2, %v1187_v55  ;;  %v686_v5 = vpop.f32.mrb[5].mxu1 }
 0x1f0   :  { %v687_v1 = vadd.f32 %v1187_v55, %v686_v5  ;;  %v1289_v6 = vpop.f32.mrb[6].mxu1 }
 0x1f1   :  { %v689_v7 = vpop.f32.mrb[7].mxu1  ;;  %v698_v9 = vadd.f32 %v1289_v6, %v1187_v55 }
 0x1f2   :  { %1333 = vtanh.f32 %v687_v1  ;;  %v690_v10 = vadd.f32 %v1187_v55, %v689_v7 }
 0x1f3   :  { %v1326_v11 = vpop.eup %1325  ;;  %1335 = vtanh.f32 %v695_v4 }
 0x1f4   :  { %v1328_v12 = vpop.eup %1327  ;;  %1337 = vtanh.f32 %v690_v10  ;;  %v718_v21 = vmul.f32 %v1326_v11, %v1196_v8 }
 0x1f5   :  { %v1330_v19 = vpop.eup %1329  ;;  %v716_v22 = vmul.f32 %v1328_v12, %v1196_v8  ;;  %1339 = vtanh.f32 %v698_v9 }
 0x1f6   :  { %v1332_v23 = vpop.eup %1331  ;;  %728 = vadd.xlane.f32.xlu0 %v718_v21  ;;  %v719_v38 = vmul.f32 %v1330_v19, %v1196_v8 }
 0x1f7   :  { %724 = vadd.xlane.f32.xlu1 %v716_v22  ;;  %v717_v33 = vmul.f32 %v1332_v23, %v1196_v8 }
 0x1fa   :  { %726 = vadd.xlane.f32.xlu0 %v717_v33 }
 0x1fb   :  { %730 = vadd.xlane.f32.xlu1 %v719_v38 }
 0x1fc   :  { %v1334_v43 = vpop.eup %1333 }
 0x1fd   :  { %v1336_v46 = vpop.eup %1335  ;;  %v720_v13 = vmul.f32 %v1334_v43, %v1196_v8 }
 0x1fe   :  { %v1338_v14 = vpop.eup %1337  ;;  %v722_v17 = vmul.f32 %v1336_v46, %v1196_v8 }
 0x1ff   :  { %732 = vadd.xlane.f32.xlu0 %v720_v13  ;;  %v721_v15 = vmul.f32 %v1338_v14, %v1196_v8  ;;  %v1340_v16 = vpop.eup %1339 }
 0x200   :  { %v723_v51 = vmul.f32 %v1340_v16, %v1196_v8 }
 0x201   :  { %734 = vadd.xlane.f32.xlu1 %v721_v15 }
 0x203   :  { %736 = vadd.xlane.f32.xlu0 %v722_v17 }
 0x205   :  { %738 = vadd.xlane.f32.xlu1 %v723_v51 }
 0x283   :  { %v729_v52 = vpop.xlane.xlu0 %728 }
 0x284   :  { %v763_v57 = vrot.slane %v729_v52, 4  ;;  %v725_v62 = vpop.xlane.xlu1 %724 }
 0x285   :  { %v751_v20 = vrot.slane %v725_v62, 4 }
 0x286   :  { %v764_v26 = vmax.f32 %v729_v52, %v763_v57 }
 0x287   :  { %v752_v29 = vmax.f32 %v725_v62, %v751_v20  ;;  %v727_v36 = vpop.xlane.xlu0 %726 }
 0x288   :  { %v765_v37 = vrot.slane %v764_v26, 2  ;;  %v757_v39 = vrot.slane %v727_v36, 4  ;;  %v731_v18 = vpop.xlane.xlu1 %730 }
 0x289   :  { %v753_v41 = vrot.slane %v752_v29, 2  ;;  %v769_v45 = vrot.slane %v731_v18, 4 }
 0x28a   :  { %v766_v54 = vmax.f32 %v764_v26, %v765_v37  ;;  %v758_v24 = vmax.f32 %v727_v36, %v757_v39 }
 0x28b   :  { %v754_v55 = vmax.f32 %v752_v29, %v753_v41  ;;  %v770_v56 = vmax.f32 %v731_v18, %v769_v45 }
 0x28c   :  { %v767_v58 = vrot.slane %v766_v54, 1  ;;  %v759_v59 = vrot.slane %v758_v24, 2  ;;  %v733_v60 = vpop.xlane.xlu0 %732 }
 0x28d   :  { %v755_v61 = vrot.slane %v754_v55, 1  ;;  %v771_v63 = vrot.slane %v770_v56, 2  ;;  %v775_v0 = vrot.slane %v733_v60, 4 }
 0x28e   :  { %v768_v3 = vmax.f32 %v766_v54, %v767_v58  ;;  %v760_v2 = vmax.f32 %v758_v24, %v759_v59  ;;  %v735_v4 = vpop.xlane.xlu1 %734 }
 0x28f   :  { %v756_v5 = vmax.f32 %v754_v55, %v755_v61  ;;  %v772_v1 = vmax.f32 %v770_v56, %v771_v63  ;;  %v776_v6 = vmax.f32 %v733_v60, %v775_v0  ;;  %v781_v7 = vrot.slane %v735_v4, 4 }
 0x290   :  { %v801_v8 = vsub.f32 %v729_v52, %v768_v3  ;;  %v761_v9 = vrot.slane %v760_v2, 1  ;;  %v737_v10 = vpop.xlane.xlu0 %736 }
 0x291   :  { %v799_v11 = vsub.f32 %v725_v62, %v756_v5  ;;  %v773_v12 = vrot.slane %v772_v1, 1  ;;  %v777_v21 = vrot.slane %v776_v6, 2  ;;  %v782_v19 = vmax.f32 %v735_v4, %v781_v7 }
 0x292   :  { %v811_v22 = vmul.f32 1.442695, %v801_v8  ;;  %v762_v23 = vmax.f32 %v760_v2, %v761_v9  ;;  %v787_v33 = vrot.slane %v737_v10, 4  ;;  %v739_v38 = vpop.xlane.xlu1 %738 }
 0x293   :  { %v807_v43 = vmul.f32 1.442695, %v799_v11  ;;  %v774_v46 = vmax.f32 %v772_v1, %v773_v12  ;;  %v778_v13 = vmax.f32 %v776_v6, %v777_v21  ;;  %v783_v14 = vrot.slane %v782_v19, 2 }
 0x294   :  { %1341 = vpow2.f32 %v811_v22  ;;  %v800_v15 = vsub.f32 %v727_v36, %v762_v23  ;;  %v788_v16 = vmax.f32 %v737_v10, %v787_v33  ;;  %v793_v17 = vrot.slane %v739_v38, 4 }
 0x295   :  { %1343 = vpow2.f32 %v807_v43  ;;  %v802_v51 = vsub.f32 %v731_v18, %v774_v46  ;;  %v779_v52 = vrot.slane %v778_v13, 1  ;;  %v784_v57 = vmax.f32 %v782_v19, %v783_v14 }
 0x296   :  { %v809_v62 = vmul.f32 1.442695, %v800_v15  ;;  %v789_v20 = vrot.slane %v788_v16, 2  ;;  %v794_v26 = vmax.f32 %v739_v38, %v793_v17 }
 0x297   :  { %v813_v29 = vmul.f32 1.442695, %v802_v51  ;;  %v780_v37 = vmax.f32 %v778_v13, %v779_v52  ;;  %v785_v39 = vrot.slane %v784_v57, 1 }
 0x298   :  { %1345 = vpow2.f32 %v809_v62  ;;  %v790_v41 = vmax.f32 %v788_v16, %v789_v20  ;;  %v795_v45 = vrot.slane %v794_v26, 2 }
 0x299   :  { %1347 = vpow2.f32 %v813_v29  ;;  %v803_v54 = vsub.f32 %v733_v60, %v780_v37  ;;  %v786_v24 = vmax.f32 %v784_v57, %v785_v39 }
 0x29a   :  { %v791_v55 = vrot.slane %v790_v41, 1  ;;  %v796_v36 = vmax.f32 %v794_v26, %v795_v45 }
 0x29b   :  { %v815_v56 = vmul.f32 1.442695, %v803_v54  ;;  %v804_v58 = vsub.f32 %v735_v4, %v786_v24 }
 0x29c   :  { %v792_v59 = vmax.f32 %v790_v41, %v791_v55  ;;  %v797_v18 = vrot.slane %v796_v36, 1 }
 0x29d   :  { %1349 = vpow2.f32 %v815_v56  ;;  %v817_v61 = vmul.f32 1.442695, %v804_v58 }
 0x29e   :  { %v1698_v63 = vpop.eup %1341  ;;  %v805_v0 = vsub.f32 %v737_v10, %v792_v59  ;;  %v798_v3 = vmax.f32 %v796_v36, %v797_v18 }
 0x29f   :  { %v1700_v2 = vpop.eup %1343  ;;  %v835_v5 = vrot.slane %v1698_v63, 4  ;;  %1351 = vpow2.f32 %v817_v61 }
 0x2a0   :  { %v823_v60 = vrot.slane %v1700_v2, 4  ;;  %v819_v1 = vmul.f32 1.442695, %v805_v0  ;;  %v806_v6 = vsub.f32 %v739_v38, %v798_v3 }
 0x2a1   :  { %v836_v7 = vadd.f32 %v1698_v63, %v835_v5 }
 0x2a2   :  { %v1705_v4 = vpop.eup %1345  ;;  %v824_v8 = vadd.f32 %v1700_v2, %v823_v60  ;;  %1353 = vpow2.f32 %v819_v1  ;;  %v821_v9 = vmul.f32 1.442695, %v806_v6 }
 0x2a3   :  { %v1708_v11 = vpop.eup %1347  ;;  %v837_v10 = vrot.slane %v836_v7, 2  ;;  %v829_v12 = vrot.slane %v1705_v4, 4 }
 0x2a4   :  { %v825_v21 = vrot.slane %v824_v8, 2  ;;  %v841_v19 = vrot.slane %v1708_v11, 4  ;;  %1355 = vpow2.f32 %v821_v9 }
 0x2a5   :  { %v838_v22 = vadd.f32 %v837_v10, %v836_v7  ;;  %v830_v23 = vadd.f32 %v1705_v4, %v829_v12 }
 0x2a6   :  { %v826_v33 = vadd.f32 %v825_v21, %v824_v8  ;;  %v842_v38 = vadd.f32 %v1708_v11, %v841_v19 }
 0x2a7   :  { %v1714_v43 = vpop.eup %1349  ;;  %v839_v46 = vrot.slane %v838_v22, 1  ;;  %v831_v13 = vrot.slane %v830_v23, 2 }
 0x2a8   :  { %v827_v14 = vrot.slane %v826_v33, 1  ;;  %v843_v15 = vrot.slane %v842_v38, 2  ;;  %v847_v16 = vrot.slane %v1714_v43, 4 }
 0x2a9   :  { %v1717_v17 = vpop.eup %1351  ;;  %v840_v51 = vadd.f32 %v839_v46, %v838_v22  ;;  %v832_v52 = vadd.f32 %v831_v13, %v830_v23 }
 0x2aa   :  { %v828_v57 = vadd.f32 %v827_v14, %v826_v33  ;;  %v844_v62 = vadd.f32 %v843_v15, %v842_v38  ;;  %v848_v20 = vadd.f32 %v1714_v43, %v847_v16  ;;  %v853_v26 = vrot.slane %v1717_v17, 4 }
 0x2ab   :  { %1357 = vrcp.f32 %v840_v51  ;;  %v833_v29 = vrot.slane %v832_v52, 1 }
 0x2ac   :  { %v1721_v37 = vpop.eup %1353  ;;  %1359 = vrcp.f32 %v828_v57  ;;  %v845_v39 = vrot.slane %v844_v62, 1  ;;  %v849_v41 = vrot.slane %v848_v20, 2  ;;  %v854_v45 = vadd.f32 %v1717_v17, %v853_v26 }
 0x2ad   :  { %v834_v54 = vadd.f32 %v833_v29, %v832_v52  ;;  %v859_v24 = vrot.slane %v1721_v37, 4  ;;  %v945_v52 = vlaneseq }
 0x2ae   :  { %v1725_v55 = vpop.eup %1355  ;;  %v846_v36 = vadd.f32 %v845_v39, %v844_v62  ;;  %v850_v56 = vadd.f32 %v849_v41, %v848_v20  ;;  %v855_v58 = vrot.slane %v854_v45, 2 }
 0x2af   :  { %1361 = vrcp.f32 %v834_v54  ;;  %v860_v59 = vadd.f32 %v1721_v37, %v859_v24  ;;  %v865_v18 = vrot.slane %v1725_v55, 4  ;;  %v946_v26 = vand.u32 127, %v945_v52 }
 0x2b0   :  { %1363 = vrcp.f32 %v846_v36  ;;  %v851_v61 = vrot.slane %v850_v56, 1  ;;  %v856_v0 = vadd.f32 %v855_v58, %v854_v45 }
 0x2b1   :  { %v861_v3 = vrot.slane %v860_v59, 2  ;;  %v866_v5 = vadd.f32 %v1725_v55, %v865_v18  ;;  %vm947_vm7 = vcmp.lt.s32.totalorder %v946_v26, 32 }
 0x2b2   :  { %v852_v60 = vadd.f32 %v851_v61, %v850_v56  ;;  %v857_v1 = vrot.slane %v856_v0, 1 }
 0x2b3   :  { %v862_v6 = vadd.f32 %v861_v3, %v860_v59  ;;  %v867_v7 = vrot.slane %v866_v5, 2 }
 0x2b4   :  { %v858_v8 = vadd.f32 %v857_v1, %v856_v0  ;;  %1365 = vrcp.f32 %v852_v60 }
 0x2b5   :  { %v1358_v9 = vpop.eup %1357  ;;  %v863_v10 = vrot.slane %v862_v6, 1  ;;  %v868_v12 = vadd.f32 %v867_v7, %v866_v5 }
 0x2b6   :  { %v1360_v21 = vpop.eup %1359  ;;  %1367 = vrcp.f32 %v858_v8  ;;  %v881_v19 = vmul.f32 %v1358_v9, %v1698_v63 }
 0x2b7   :  { %v864_v22 = vadd.f32 %v863_v10, %v862_v6  ;;  %v869_v23 = vrot.slane %v868_v12, 1  ;;  %v879_v33 = vmul.f32 %v1360_v21, %v1700_v2 }
 0x2b8   :  { %v889_v38 = vmul.f32 %v881_v19, %v555_v35 }
 0x2b9   :  { %v1362_v46 = vpop.eup %1361  ;;  %v870_v13 = vadd.f32 %v869_v23, %v868_v12  ;;  %1369 = vrcp.f32 %v864_v22  ;;  %v887_v14 = vmul.f32 %v879_v33, %v553_v32 }
 0x2ba   :  { %v1364_v15 = vpop.eup %1363  ;;  %v880_v16 = vmul.f32 %v1362_v46, %v1705_v4  ;;  %v907_v51 = vrot.slane %v889_v38, 4 }
 0x2bb   :  { %1371 = vrcp.f32 %v870_v13  ;;  %v882_v63 = vmul.f32 %v1364_v15, %v1708_v11  ;;  %v895_v57 = vrot.slane %v887_v14, 4 }
 0x2bc   :  { %v888_v2 = vmul.f32 %v880_v16, %v554_v34  ;;  %v908_v27 = vadd.f32 %v907_v51, %v889_v38 }
 0x2bd   :  { %v890_v35 = vmul.f32 %v882_v63, %v556_v31  ;;  %v896_v62 = vadd.f32 %v895_v57, %v887_v14 }
 0x2be   :  { %v1366_v20 = vpop.eup %1365  ;;  %v901_v25 = vrot.slane %v888_v2, 4  ;;  %v909_v32 = vrot.slane %v908_v27, 2 }
 0x2bf   :  { %v883_v4 = vmul.f32 %v1366_v20, %v1714_v43  ;;  %v897_v29 = vrot.slane %v896_v62, 2  ;;  %v913_v39 = vrot.slane %v890_v35, 4 }
 0x2c0   :  { %v1368_v41 = vpop.eup %1367  ;;  %v902_v45 = vadd.f32 %v901_v25, %v888_v2  ;;  %v910_v11 = vadd.f32 %v909_v32, %v908_v27 }
 0x2c1   :  { %v884_v54 = vmul.f32 %v1368_v41, %v1717_v17  ;;  %v891_v30 = vmul.f32 %v883_v4, %v557_v49  ;;  %v898_v34 = vadd.f32 %v897_v29, %v896_v62  ;;  %v914_v28 = vadd.f32 %v913_v39, %v890_v35 }
 0x2c2   :  { %v903_v31 = vrot.slane %v902_v45, 2  ;;  %v911_v24 = vrot.slane %v910_v11, 1 }
 0x2c3   :  { %v1370_v36 = vpop.eup %1369  ;;  %v892_v56 = vmul.f32 %v884_v54, %v558_v50  ;;  %v915_v43 = vrot.slane %v914_v28, 2  ;;  %v919_v58 = vrot.slane %v891_v30, 4  ;;  %v899_v18 = vrot.slane %v898_v34, 1 }
 0x2c4   :  { %v885_v59 = vmul.f32 %v1370_v36, %v1721_v37  ;;  %v904_v61 = vadd.f32 %v903_v31, %v902_v45  ;;  %v1749_v17 = vadd.f32 %v911_v24, %v910_v11  ;;  %v1755_v50 = vsel %vm947_vm7, 1.0, %v1375_v47 }
 0x2c5   :  { %v1372_v0 = vpop.eup %1371  ;;  %v916_v40 = vadd.f32 %v915_v43, %v914_v28  ;;  %v920_v49 = vadd.f32 %v919_v58, %v891_v30  ;;  %v925_v3 = vrot.slane %v892_v56, 4  ;;  %v900_v9 = vadd.f32 %v899_v18, %v898_v34 }
 0x2c6   :  { %v886_v5 = vmul.f32 %v1372_v0, %v1725_v55  ;;  %v893_v60 = vmul.f32 %v885_v59, %v559_v53  ;;  %v905_v1 = vrot.slane %v904_v61, 1  ;;  %v952_v42 = vmul.f32 %v1755_v50, %v1749_v17 }
 0x2c7   :  { %v917_v6 = vrot.slane %v916_v40, 1  ;;  %v921_v37 = vrot.slane %v920_v49, 2  ;;  %v926_v7 = vadd.f32 %v925_v3, %v892_v56  ;;  %v950_v13 = vmul.f32 %v1755_v50, %v900_v9 }
 0x2c8   :  { %v894_v8 = vmul.f32 %v886_v5, %v560_v48  ;;  %v906_v10 = vadd.f32 %v905_v1, %v904_v61  ;;  %v931_v12 = vrot.slane %v893_v60, 4  ;;  %v969_v51 = vrot.slane %v952_v42, 6 }
 0x2c9   :  { %v918_v21 = vadd.f32 %v917_v6, %v916_v40  ;;  %v922_v19 = vadd.f32 %v921_v37, %v920_v49  ;;  %v927_v55 = vrot.slane %v926_v7, 2 }
 0x2ca   :  { %v932_v53 = vadd.f32 %v931_v12, %v893_v60  ;;  %v937_v22 = vrot.slane %v894_v8, 4  ;;  %v951_v23 = vmul.f32 %v1755_v50, %v906_v10 }
 0x2cb   :  { %v923_v33 = vrot.slane %v922_v19, 1  ;;  %v928_v38 = vadd.f32 %v927_v55, %v926_v7  ;;  %v953_v46 = vmul.f32 %v1755_v50, %v918_v21 }
 0x2cc   :  { %v933_v44 = vrot.slane %v932_v53, 2  ;;  %v938_v48 = vadd.f32 %v937_v22, %v894_v8  ;;  %v966_v14 = vrot.slane %v951_v23, 7 }
 0x2cd   :  { %v924_v15 = vadd.f32 %v923_v33, %v922_v19  ;;  %v929_v16 = vrot.slane %v928_v38, 1  ;;  %v972_v2 = vrot.slane %v953_v46, 5 }
 0x2ce   :  { %v934_v52 = vadd.f32 %v933_v44, %v932_v53  ;;  %v939_v63 = vrot.slane %v938_v48, 2  ;;  %v968_v57 = vsel %vm967_vm8, %v966_v14, %v950_v13 }
 0x2cf   :  { %v930_v27 = vadd.f32 %v929_v16, %v928_v38  ;;  %v954_v35 = vmul.f32 %v1755_v50, %v924_v15  ;;  %v971_v62 = vsel %vm970_vm9, %v969_v51, %v968_v57 }
 0x2d0   :  { %v935_v20 = vrot.slane %v934_v52, 1  ;;  %v940_v25 = vadd.f32 %v939_v63, %v938_v48  ;;  %v974_v39 = vsel %vm973_vm10, %v972_v2, %v971_v62 }
 0x2d1   :  { %v955_v32 = vmul.f32 %v1755_v50, %v930_v27  ;;  %v975_v26 = vrot.slane %v954_v35, 4 }
 0x2d2   :  { %v936_v4 = vadd.f32 %v935_v20, %v934_v52  ;;  %v941_v29 = vrot.slane %v940_v25, 1 }
 0x2d3   :  { %v977_v41 = vsel %vm976_vm11, %v975_v26, %v974_v39  ;;  %v978_v45 = vrot.slane %v955_v32, 3 }
 0x2d4   :  { %v942_v11 = vadd.f32 %v941_v29, %v940_v25  ;;  %v956_v54 = vmul.f32 %v1755_v50, %v936_v4 }
 0x2d5   :  { %v980_v30 = vsel %vm979_vm12, %v978_v45, %v977_v41 }
 0x2d6   :  { %v957_v34 = vmul.f32 %v1755_v50, %v942_v11  ;;  %v981_v28 = vrot.slane %v956_v54, 2 }
 0x2d8   :  { %v983_v31 = vsel %vm982_vm13, %v981_v28, %v980_v30  ;;  %v984_v24 = vrot.slane %v957_v34, 1 }
 0x2da   :  { %v986_v36 = vsel %vm985_vm14, %v984_v24, %v983_v31 }
 0x2db   :  { %988 = vadd.xlane.f32.xlu0 %v986_v36 }
 0x368   :  { %v989_v56 = vpop.xlane.xlu0 %988 }
 0x369   :  { %v991_v43 = vmul.f32 0.03125, %v989_v56 }
 0x36b   :  { %v993_v58 = vrot.slane %v991_v43, 1  ;;  %v994_v59 = vrot.slane %v991_v43, 2  ;;  %v995_v18 = vrot.slane %v991_v43, 3  ;;  %v996_v61 = vrot.slane %v991_v43, 4 }
 0x36c   :  { %v997_v0 = vrot.slane %v991_v43, 5  ;;  %v998_v40 = vrot.slane %v991_v43, 6  ;;  %v999_v49 = vrot.slane %v991_v43, 7  ;;  %v1008_v3 = vsub.f32 %v900_v9, %v991_v43 }
 0x36d   :  { %v1009_v5 = vsub.f32 %v906_v10, %v993_v58  ;;  %v1010_v60 = vsub.f32 %v1749_v17, %v994_v59  ;;  %v1011_v1 = vsub.f32 %v918_v21, %v995_v18  ;;  %v1012_v47 = vsub.f32 %v924_v15, %v996_v61 }
 0x36e   :  { %v1013_v6 = vsub.f32 %v930_v27, %v997_v0  ;;  %v1014_v37 = vsub.f32 %v936_v4, %v998_v40  ;;  %v1015_v7 = vsub.f32 %v942_v11, %v999_v49  ;;  %v1016_v8 = vmul.f32 %v1755_v50, %v1008_v3  ;;  %v1198_v4 = vld [vmem:[%s1813_s6] ss:$0 sm:$0xff] }
 0x36f   :  { %v1017_v12 = vmul.f32 %v1755_v50, %v1009_v5  ;;  %v1018_v19 = vmul.f32 %v1755_v50, %v1010_v60  ;;  %v1019_v55 = vmul.f32 %v1755_v50, %v1011_v1  ;;  %v1020_v42 = vmul.f32 %v1755_v50, %v1012_v47  ;;  %v1199_v49 = vld [vmem:[%s1814_s7] ss:$0 sm:$0xff] }
 0x370   :  { %v1021_v9 = vmul.f32 %v1755_v50, %v1013_v6  ;;  %v1022_v10 = vmul.f32 %v1755_v50, %v1014_v37  ;;  %v1023_v17 = vmul.f32 %v1755_v50, %v1015_v7  ;;  %v1024_v33 = vmul.f32 %v1016_v8, %v1016_v8 }
 0x371   :  { %v1025_v21 = vmul.f32 %v1017_v12, %v1017_v12  ;;  %v1026_v53 = vmul.f32 %v1018_v19, %v1018_v19  ;;  %v1027_v22 = vmul.f32 %v1019_v55, %v1019_v55  ;;  %v1028_v23 = vmul.f32 %v1020_v42, %v1020_v42 }
 0x372   :  { %v1029_v38 = vmul.f32 %v1021_v9, %v1021_v9  ;;  %v1030_v48 = vmul.f32 %v1022_v10, %v1022_v10  ;;  %v1031_v13 = vmul.f32 %v1023_v17, %v1023_v17 }
 0x373   :  { %v1040_v46 = vrot.slane %v1025_v21, 7  ;;  %v1042_v44 = vrot.slane %v1026_v53, 6  ;;  %v1044_v15 = vrot.slane %v1027_v22, 5  ;;  %v1046_v51 = vrot.slane %v1028_v23, 4 }
 0x374   :  { %v1048_v63 = vrot.slane %v1029_v38, 3  ;;  %v1050_v57 = vrot.slane %v1030_v48, 2  ;;  %v1052_v27 = vrot.slane %v1031_v13, 1 }
 0x375   :  { %v1041_v14 = vsel %vm967_vm8, %v1040_v46, %v1024_v33 }
 0x376   :  { %v1043_v16 = vsel %vm970_vm9, %v1042_v44, %v1041_v14 }
 0x377   :  { %v1045_v52 = vsel %vm973_vm10, %v1044_v15, %v1043_v16 }
 0x378   :  { %v1047_v50 = vsel %vm976_vm11, %v1046_v51, %v1045_v52 }
 0x379   :  { %v1049_v2 = vsel %vm979_vm12, %v1048_v63, %v1047_v50 }
 0x37a   :  { %v1051_v35 = vsel %vm982_vm13, %v1050_v57, %v1049_v2 }
 0x37b   :  { %v1053_v62 = vsel %vm985_vm14, %v1052_v27, %v1051_v35 }
 0x37c   :  { %1055 = vadd.xlane.f32.xlu1 %v1053_v62 }
 0x409   :  { %v1056_v20 = vpop.xlane.xlu1 %1055 }
 0x40a   :  { %v1057_v25 = vmul.f32 0.03125, %v1056_v20 }
 0x40c   :  { %v1058_v32 = vadd.f32 1e-05, %v1057_v25 }
 0x40e   :  { %1373 = vrsqrt.f32 %v1058_v32 }
 0x418   :  { %v1374_v26 = vpop.eup %1373 }
 0x419   :  { %v1061_v29 = vrot.slane %v1374_v26, 1  ;;  %v1062_v39 = vrot.slane %v1374_v26, 2  ;;  %v1063_v41 = vrot.slane %v1374_v26, 3  ;;  %v1064_v45 = vrot.slane %v1374_v26, 4 }
 0x41a   :  { %v1065_v11 = vrot.slane %v1374_v26, 5  ;;  %v1066_v54 = vrot.slane %v1374_v26, 6  ;;  %v1067_v30 = vrot.slane %v1374_v26, 7  ;;  %v1076_v34 = vmul.f32 %v1374_v26, %v1008_v3 }
 0x41b   :  { %v1077_v28 = vmul.f32 %v1061_v29, %v1009_v5  ;;  %v1078_v31 = vmul.f32 %v1062_v39, %v1010_v60  ;;  %v1079_v24 = vmul.f32 %v1063_v41, %v1011_v1  ;;  %v1080_v36 = vmul.f32 %v1064_v45, %v1012_v47 }
 0x41c   :  { %v1081_v56 = vmul.f32 %v1065_v11, %v1013_v6  ;;  %v1082_v43 = vmul.f32 %v1066_v54, %v1014_v37  ;;  %v1083_v58 = vmul.f32 %v1067_v30, %v1015_v7  ;;  %v1090_v59 = vmul.f32 %v1198_v4, %v1076_v34 }
 0x41d   :  { %v1091_v18 = vmul.f32 %v1198_v4, %v1077_v28  ;;  %v1092_v61 = vmul.f32 %v1198_v4, %v1078_v31  ;;  %v1093_v0 = vmul.f32 %v1198_v4, %v1079_v24  ;;  %v1094_v40 = vmul.f32 %v1198_v4, %v1080_v36 }
 0x41e   :  { %v1095_v8 = vmul.f32 %v1198_v4, %v1081_v56  ;;  %v1096_v12 = vmul.f32 %v1198_v4, %v1082_v43  ;;  %v1097_v19 = vmul.f32 %v1198_v4, %v1083_v58  ;;  %v1104_v47 = vadd.f32 %v1199_v49, %v1090_v59 }
 0x41f   :  { %v1105_v3 = vadd.f32 %v1199_v49, %v1091_v18  ;;  %v1106_v5 = vadd.f32 %v1199_v49, %v1092_v61  ;;  %v1107_v60 = vadd.f32 %v1199_v49, %v1093_v0  ;;  %v1108_v1 = vadd.f32 %v1199_v49, %v1094_v40 }
 0x420   :  { %v1109_v6 = vadd.f32 %v1199_v49, %v1095_v8  ;;  %v1110_v55 = vadd.f32 %v1199_v49, %v1096_v12  ;;  %v1111_v42 = vadd.f32 %v1199_v49, %v1097_v19 }
 0x421   :  { %v1120_v37 = vrot.slane %v1105_v3, 7  ;;  %v1122_v7 = vrot.slane %v1106_v5, 6  ;;  %v1124_v10 = vrot.slane %v1107_v60, 5  ;;  %v1126_v21 = vrot.slane %v1108_v1, 4 }
 0x422   :  { %v1128_v22 = vrot.slane %v1109_v6, 3  ;;  %v1130_v33 = vrot.slane %v1110_v55, 2  ;;  %v1132_v46 = vrot.slane %v1111_v42, 1 }
 0x423   :  { %v1121_v9 = vsel %vm967_vm8, %v1120_v37, %v1104_v47 }
 0x424   :  { %v1123_v17 = vsel %vm970_vm9, %v1122_v7, %v1121_v9 }
 0x425   :  { %v1125_v53 = vsel %vm973_vm10, %v1124_v10, %v1123_v17 }
 0x426   :  { %v1127_v23 = vsel %vm976_vm11, %v1126_v21, %v1125_v53 }
 0x427   :  { %v1129_v38 = vsel %vm979_vm12, %v1128_v22, %v1127_v23 }
 0x428   :  { %v1131_v44 = vsel %vm982_vm13, %v1130_v33, %v1129_v38 }
 0x429   :  { %v1133_v48 = vsel %vm985_vm14, %v1132_v46, %v1131_v44 }
 0x42a   :  { %1135 = vst [vmem:[%s1815_s8] sm:$0xff] %v1133_v48 }

</bundles_post_ra>
